<compile_context>
chip_gen: v7x
topology: tpu7x:2x2x1
jax: 0.10.0
libtpu: 0.0.40
codegen_flags: <defaults>
</compile_context>

<pallas_src>
import functools
import numpy as np
import jax
import jax.numpy as jnp
from jax.experimental import pallas as pl
from jax.experimental.pallas import tpu as pltpu

_VMEM = pl.BlockSpec(memory_space=pltpu.MemorySpace.VMEM)

# Row offsets inside the packed 128-wide weight buffer wA (bf16).
# All offsets are multiples of 16 -> clean bf16 sublane tiles when sliced.
_WS1, _WS2, _W2, _W3, _WF1, _WF3 = 0, 64, 640, 896, 1024, 1408
_WA_ROWS = 1472
# Row offsets inside the packed 64-wide weight buffer wB (bf16).
_W1, _WF2 = 0, 16
_WB_ROWS = 144
# Row indices inside the packed (10, 128) f32 bias/BN buffer.
_B1, _BNG, _BNB, _BS1, _BS2, _B2, _B3, _BF1, _BF2, _BF3 = range(10)


# --------------------------------------------------------------- kernel -----
def _skipnet_kernel(pat_ref, xflat_ref, wa_ref, wb_ref, bias_ref, o_ref,
                    *, n_pad, n_real, eps):
    f32 = jnp.float32
    bf16 = jnp.bfloat16
    n = n_pad

    def brow(i, width=128):                       # (1, width) f32 bias row
        return bias_ref[i:i + 1, :width]

    # ---- skip1: 8x8 conv over the full 8x8 image == one matmul --------------
    x1 = jnp.dot(xflat_ref[...], wa_ref[_WS1:_WS1 + 64, :],
                 preferred_element_type=f32) + brow(_BS1)            # (n, 128)

    # ---- conv1 (3x3, 1->64) as im2col matmul --------------------------------
    # pat rows are ordered (oh*6 + ow)*n + sample, so each output spatial
    # position is a contiguous, sublane-aligned n-row block of c1.
    c1 = jnp.dot(pat_ref[...], wb_ref[_W1:_W1 + 9, :],
                 preferred_element_type=f32) + brow(_B1, 64)         # (36n, 64)

    def c1_block(oh, ow):
        s = oh * 6 + ow
        return c1[s * n:(s + 1) * n, :]                              # (n, 64)

    # ---- pool1 (2x2/2): 6x6 -> 3x3, pure elementwise max of 4 blocks --------
    pooled = []                                                      # 9 x (n, 64)
    for r in range(3):
        for c in range(3):
            blk = jnp.maximum(
                jnp.maximum(c1_block(2 * r,     2 * c),
                            c1_block(2 * r,     2 * c + 1)),
                jnp.maximum(c1_block(2 * r + 1, 2 * c),
                            c1_block(2 * r + 1, 2 * c + 1)))
            pooled.append(blk)

    # ---- BatchNorm2d (training mode, biased var); padded rows masked out ----
    if n_real != n_pad:
        row_ids = jax.lax.broadcasted_iota(jnp.int32, (n_pad, 1), 0)
        valid = (row_ids < n_real).astype(f32)                       # (n, 1)
    else:
        valid = None
    cnt = float(9 * n_real)
    s1 = jnp.zeros((1, 64), f32)
    s2 = jnp.zeros((1, 64), f32)
    for blk in pooled:
        mblk = blk if valid is None else blk * valid
        s1 = s1 + jnp.sum(mblk, axis=0, keepdims=True)
        s2 = s2 + jnp.sum(mblk * blk, axis=0, keepdims=True)
    mean = s1 / cnt
    var = jnp.maximum(s2 / cnt - mean * mean, 0.0)                   # cancellation guard
    scale = brow(_BNG, 64) * jax.lax.rsqrt(var + eps)                # (1, 64)
    shift = brow(_BNB, 64) - mean * scale                            # (1, 64)
    hbn16 = [(blk * scale + shift).astype(bf16) for blk in pooled]   # 9 x (n, 64)
    # TODO(synk): BatchNorm running-stats (momentum) update is a training-time
    # side effect that does not change the forward output; intentionally omitted.

    # ---- skip2: 3x3 conv over the full 3x3 map == matmul on (n, 576) --------
    h_wide = jnp.concatenate(hbn16, axis=1)                          # (n, 576) bf16
    x2 = jnp.dot(h_wide, wa_ref[_WS2:_WS2 + 576, :],
                 preferred_element_type=f32) + brow(_BS2)            # (n, 128)

    # ---- conv2 (2x2, 64->128) on 3x3 -> 2x2, as one (4n, 256) matmul --------
    patches2 = []
    for pr in range(2):
        for pc in range(2):
            patches2.append(jnp.concatenate(
                [hbn16[(pr + dh) * 3 + (pc + dw)] for dh in (0, 1) for dw in (0, 1)],
                axis=1))                                             # (n, 256) bf16
    p2 = jnp.concatenate(patches2, axis=0)                           # (4n, 256)
    c2 = jnp.dot(p2, wa_ref[_W2:_W2 + 256, :],
                 preferred_element_type=f32) + brow(_B2)             # (4n, 128)

    # ---- pool2: 2x2 -> 1x1 = max over the 4 aligned row-blocks --------------
    pooled2 = jnp.maximum(jnp.maximum(c2[0 * n:1 * n, :], c2[1 * n:2 * n, :]),
                          jnp.maximum(c2[2 * n:3 * n, :], c2[3 * n:4 * n, :]))

    # ---- conv3 (1x1, 128->128) ----------------------------------------------
    x3 = jnp.dot(pooled2.astype(bf16), wa_ref[_W3:_W3 + 128, :],
                 preferred_element_type=f32) + brow(_B3)             # (n, 128)

    # ---- head: xcat = x + x1 + x2 ; cat ; fc1+relu ; fc2+relu ; fc3 ---------
    xcat = jnp.concatenate([x3 + x1 + x2, x1, x2], axis=1).astype(bf16)  # (n, 384)
    h = jnp.dot(xcat, wa_ref[_WF1:_WF1 + 384, :],
                preferred_element_type=f32) + brow(_BF1)
    h = jnp.maximum(h, 0.0)
    h = jnp.dot(h.astype(bf16), wb_ref[_WF2:_WF2 + 128, :],
                preferred_element_type=f32) + brow(_BF2, 64)
    h = jnp.maximum(h, 0.0)
    out = jnp.dot(h.astype(bf16), wa_ref[_WF3:_WF3 + 64, :],
                  preferred_element_type=f32) + brow(_BF3)           # (n, 128)
    o_ref[...] = out.astype(o_ref.dtype)                             # lane-dense store


# -------------------------------------------------------------- wrapper -----
def skipnet_forward(x_nchw, p):
    """x_nchw: (N, 1, 8, 8) float32 (PyTorch layout). Returns (N, 3) float32."""
    N = x_nchw.shape[0]
    n_pad = ((N + 7) // 8) * 8                     # sublane-aligned batch

    x = x_nchw.reshape(N, 8, 8)
    if n_pad != N:
        x = jnp.pad(x, ((0, n_pad - N), (0, 0), (0, 0)))
    x = x.astype(jnp.bfloat16)                     # bf16 matmul operands
    x_flat = x.reshape(n_pad, 64)                  # flattened image for skip1

    # conv1 im2col on the raw input: rows ordered (oh, ow, sample) so every
    # output spatial position is a contiguous n_pad-row block inside the kernel.
    cols = [x[:, kh:kh + 6, kw:kw + 6] for kh in range(3) for kw in range(3)]
    pat = jnp.stack(cols, axis=-1)                 # (n_pad, 6, 6, 9)
    pat = jnp.transpose(pat, (1, 2, 0, 3)).reshape(36 * n_pad, 9)

    out = pl.pallas_call(
        functools.partial(_skipnet_kernel, n_pad=n_pad, n_real=N, eps=1e-5),
        out_shape=jax.ShapeDtypeStruct((n_pad, 128), jnp.float32),
        in_specs=[_VMEM] * 5,
        out_specs=_VMEM,
    )(pat, x_flat, p["wA"], p["wB"], p["bias"])
    return out[:N, :3]


# ----------------------------------------------------------- parameters -----
def init_params(key):
    ks = iter(jax.random.split(key, 32))

    def u(shape, fan_in):
        bound = 1.0 / np.sqrt(fan_in)
        return jax.random.uniform(next(ks), shape, jnp.float32, -bound, bound)

    def conv_mat(oc, ic, k, fan_in):
        # torch layout (OC, IC, KH, KW) -> matmul layout (KH*KW*IC, OC), once at init.
        w = u((oc, ic, k, k), fan_in)
        return jnp.transpose(w, (2, 3, 1, 0)).reshape(k * k * ic, oc)

    w1,  b1  = conv_mat(64, 1, 3, 9),          u((64,), 9)
    ws1, bs1 = conv_mat(128, 1, 8, 64),        u((128,), 64)
    ws2, bs2 = conv_mat(128, 64, 3, 64 * 9),   u((128,), 64 * 9)
    w2,  b2  = conv_mat(128, 64, 2, 64 * 4),   u((128,), 64 * 4)
    w3,  b3  = conv_mat(128, 128, 1, 128),     u((128,), 128)
    # nn.Linear stores (out, in); we store the transpose (in, out) so the kernel
    # does x @ W.
    wf1, bf1 = u((128 * 3, 128), 128 * 3),     u((128,), 128 * 3)
    wf2, bf2 = u((128, 64), 128),              u((64,), 128)
    wf3, bf3 = u((64, 3), 64),                 u((3,), 64)
    bn_g = jnp.ones((64,), jnp.float32)        # BatchNorm2d affine defaults
    bn_b = jnp.zeros((64,), jnp.float32)

    # --- pack 128-wide weights into one bf16 buffer (16-row-aligned offsets) ---
    wf3_pad = jnp.pad(wf3, ((0, 0), (0, 128 - 3)))            # (64, 128), zero cols
    wa = jnp.concatenate([ws1, ws2, w2, w3, wf1, wf3_pad],
                         axis=0).astype(jnp.bfloat16)          # (1472, 128)
    assert wa.shape == (_WA_ROWS, 128)

    # --- pack 64-wide weights into a second bf16 buffer ------------------------
    w1_pad = jnp.pad(w1, ((0, 16 - 9), (0, 0)))                # 9 -> 16 rows
    wb = jnp.concatenate([w1_pad, wf2], axis=0).astype(jnp.bfloat16)   # (144, 64)
    assert wb.shape == (_WB_ROWS, 64)

    # --- pack all bias / BN vectors into one (10, 128) f32 buffer --------------
    def row(v):
        return jnp.pad(v, (0, 128 - v.shape[0]))[None, :]

    bias = jnp.concatenate(
        [row(b1), row(bn_g), row(bn_b), row(bs1), row(bs2),
         row(b2), row(b3), row(bf1), row(bf2), row(bf3)], axis=0)       # (10, 128)

    return {"wA": wa, "wB": wb, "bias": bias}


if __name__ == "__main__":
    key = jax.random.PRNGKey(0)
    pkey, xkey = jax.random.split(key)
    params = init_params(pkey)
    x = jax.random.normal(xkey, (2, 1, 8, 8), jnp.float32)   # NCHW, like PyTorch
    out = jax.jit(skipnet_forward)(x, params)
    jax.block_until_ready(out)
    assert out.shape == (2, 3) and out.dtype == jnp.float32
    print("KERNEL_OK")
</pallas_src>

<mosaic_0001>
module attributes {stable_mosaic.version = 11 : i64} {
  func.func @_skipnet_kernel(%arg0: memref<288x9xbf16, #tpu.memory_space<vmem>>, %arg1: memref<8x64xbf16, #tpu.memory_space<vmem>>, %arg2: memref<1472x128xbf16, #tpu.memory_space<vmem>>, %arg3: memref<144x64xbf16, #tpu.memory_space<vmem>>, %arg4: memref<10x128xf32, #tpu.memory_space<vmem>>, %arg5: memref<8x128xf32, #tpu.memory_space<vmem>>) attributes {dimension_semantics = [], scalar_prefetch = 0 : i64, scratch_operands = 0 : i64, tpu.core_type = #tpu.core_type<tc>} {
    %c0 = arith.constant 0 : index
    %c0_0 = arith.constant 0 : index
    %0 = vector.load %arg1[%c0, %c0_0] : memref<8x64xbf16, #tpu.memory_space<vmem>>, vector<8x64xbf16>
    %c0_1 = arith.constant 0 : index
    %c0_2 = arith.constant 0 : index
    %1 = vector.load %arg2[%c0_1, %c0_2] : memref<1472x128xbf16, #tpu.memory_space<vmem>>, vector<64x128xbf16>
    %cst = arith.constant dense<0.000000e+00> : vector<8x128xf32>
    %2 = tpu.matmul %0, %1, %cst {dimension_numbers = #tpu.dot_dimension_numbers<[1], [0], [0], [1], [0, 0, 1, 1], [], []>} : vector<8x64xbf16>, vector<64x128xbf16>, vector<8x128xf32> -> vector<8x128xf32>
    %c3 = arith.constant 3 : index
    %c0_3 = arith.constant 0 : index
    %3 = vector.load %arg4[%c3, %c0_3] : memref<10x128xf32, #tpu.memory_space<vmem>>, vector<1x128xf32>
    %4 = vector.broadcast %3 : vector<1x128xf32> to vector<8x128xf32>
    %5 = arith.addf %2, %4 : vector<8x128xf32>
    %c0_4 = arith.constant 0 : index
    %c0_5 = arith.constant 0 : index
    %6 = vector.load %arg0[%c0_4, %c0_5] : memref<288x9xbf16, #tpu.memory_space<vmem>>, vector<288x9xbf16>
    %c0_6 = arith.constant 0 : index
    %c0_7 = arith.constant 0 : index
    %7 = vector.load %arg3[%c0_6, %c0_7] : memref<144x64xbf16, #tpu.memory_space<vmem>>, vector<9x64xbf16>
    %cst_8 = arith.constant dense<0.000000e+00> : vector<288x64xf32>
    %8 = tpu.matmul %6, %7, %cst_8 {dimension_numbers = #tpu.dot_dimension_numbers<[1], [0], [0], [1], [0, 0, 1, 1], [], []>} : vector<288x9xbf16>, vector<9x64xbf16>, vector<288x64xf32> -> vector<288x64xf32>
    %c0_9 = arith.constant 0 : index
    %c0_10 = arith.constant 0 : index
    %9 = vector.load %arg4[%c0_9, %c0_10] : memref<10x128xf32, #tpu.memory_space<vmem>>, vector<1x64xf32>
    %10 = vector.broadcast %9 : vector<1x64xf32> to vector<288x64xf32>
    %11 = arith.addf %8, %10 : vector<288x64xf32>
    %12 = vector.extract_strided_slice %11 {offsets = [0, 0], sizes = [8, 64], strides = [1, 1]} : vector<288x64xf32> to vector<8x64xf32>
    %13 = vector.extract_strided_slice %11 {offsets = [8, 0], sizes = [8, 64], strides = [1, 1]} : vector<288x64xf32> to vector<8x64xf32>
    %14 = arith.maximumf %12, %13 : vector<8x64xf32>
    %15 = vector.extract_strided_slice %11 {offsets = [48, 0], sizes = [8, 64], strides = [1, 1]} : vector<288x64xf32> to vector<8x64xf32>
    %16 = vector.extract_strided_slice %11 {offsets = [56, 0], sizes = [8, 64], strides = [1, 1]} : vector<288x64xf32> to vector<8x64xf32>
    %17 = arith.maximumf %15, %16 : vector<8x64xf32>
    %18 = arith.maximumf %14, %17 : vector<8x64xf32>
    %19 = vector.extract_strided_slice %11 {offsets = [16, 0], sizes = [8, 64], strides = [1, 1]} : vector<288x64xf32> to vector<8x64xf32>
    %20 = vector.extract_strided_slice %11 {offsets = [24, 0], sizes = [8, 64], strides = [1, 1]} : vector<288x64xf32> to vector<8x64xf32>
    %21 = arith.maximumf %19, %20 : vector<8x64xf32>
    %22 = vector.extract_strided_slice %11 {offsets = [64, 0], sizes = [8, 64], strides = [1, 1]} : vector<288x64xf32> to vector<8x64xf32>
    %23 = vector.extract_strided_slice %11 {offsets = [72, 0], sizes = [8, 64], strides = [1, 1]} : vector<288x64xf32> to vector<8x64xf32>
    %24 = arith.maximumf %22, %23 : vector<8x64xf32>
    %25 = arith.maximumf %21, %24 : vector<8x64xf32>
    %26 = vector.extract_strided_slice %11 {offsets = [32, 0], sizes = [8, 64], strides = [1, 1]} : vector<288x64xf32> to vector<8x64xf32>
    %27 = vector.extract_strided_slice %11 {offsets = [40, 0], sizes = [8, 64], strides = [1, 1]} : vector<288x64xf32> to vector<8x64xf32>
    %28 = arith.maximumf %26, %27 : vector<8x64xf32>
    %29 = vector.extract_strided_slice %11 {offsets = [80, 0], sizes = [8, 64], strides = [1, 1]} : vector<288x64xf32> to vector<8x64xf32>
    %30 = vector.extract_strided_slice %11 {offsets = [88, 0], sizes = [8, 64], strides = [1, 1]} : vector<288x64xf32> to vector<8x64xf32>
    %31 = arith.maximumf %29, %30 : vector<8x64xf32>
    %32 = arith.maximumf %28, %31 : vector<8x64xf32>
    %33 = vector.extract_strided_slice %11 {offsets = [96, 0], sizes = [8, 64], strides = [1, 1]} : vector<288x64xf32> to vector<8x64xf32>
    %34 = vector.extract_strided_slice %11 {offsets = [104, 0], sizes = [8, 64], strides = [1, 1]} : vector<288x64xf32> to vector<8x64xf32>
    %35 = arith.maximumf %33, %34 : vector<8x64xf32>
    %36 = vector.extract_strided_slice %11 {offsets = [144, 0], sizes = [8, 64], strides = [1, 1]} : vector<288x64xf32> to vector<8x64xf32>
    %37 = vector.extract_strided_slice %11 {offsets = [152, 0], sizes = [8, 64], strides = [1, 1]} : vector<288x64xf32> to vector<8x64xf32>
    %38 = arith.maximumf %36, %37 : vector<8x64xf32>
    %39 = arith.maximumf %35, %38 : vector<8x64xf32>
    %40 = vector.extract_strided_slice %11 {offsets = [112, 0], sizes = [8, 64], strides = [1, 1]} : vector<288x64xf32> to vector<8x64xf32>
    %41 = vector.extract_strided_slice %11 {offsets = [120, 0], sizes = [8, 64], strides = [1, 1]} : vector<288x64xf32> to vector<8x64xf32>
    %42 = arith.maximumf %40, %41 : vector<8x64xf32>
    %43 = vector.extract_strided_slice %11 {offsets = [160, 0], sizes = [8, 64], strides = [1, 1]} : vector<288x64xf32> to vector<8x64xf32>
    %44 = vector.extract_strided_slice %11 {offsets = [168, 0], sizes = [8, 64], strides = [1, 1]} : vector<288x64xf32> to vector<8x64xf32>
    %45 = arith.maximumf %43, %44 : vector<8x64xf32>
    %46 = arith.maximumf %42, %45 : vector<8x64xf32>
    %47 = vector.extract_strided_slice %11 {offsets = [128, 0], sizes = [8, 64], strides = [1, 1]} : vector<288x64xf32> to vector<8x64xf32>
    %48 = vector.extract_strided_slice %11 {offsets = [136, 0], sizes = [8, 64], strides = [1, 1]} : vector<288x64xf32> to vector<8x64xf32>
    %49 = arith.maximumf %47, %48 : vector<8x64xf32>
    %50 = vector.extract_strided_slice %11 {offsets = [176, 0], sizes = [8, 64], strides = [1, 1]} : vector<288x64xf32> to vector<8x64xf32>
    %51 = vector.extract_strided_slice %11 {offsets = [184, 0], sizes = [8, 64], strides = [1, 1]} : vector<288x64xf32> to vector<8x64xf32>
    %52 = arith.maximumf %50, %51 : vector<8x64xf32>
    %53 = arith.maximumf %49, %52 : vector<8x64xf32>
    %54 = vector.extract_strided_slice %11 {offsets = [192, 0], sizes = [8, 64], strides = [1, 1]} : vector<288x64xf32> to vector<8x64xf32>
    %55 = vector.extract_strided_slice %11 {offsets = [200, 0], sizes = [8, 64], strides = [1, 1]} : vector<288x64xf32> to vector<8x64xf32>
    %56 = arith.maximumf %54, %55 : vector<8x64xf32>
    %57 = vector.extract_strided_slice %11 {offsets = [240, 0], sizes = [8, 64], strides = [1, 1]} : vector<288x64xf32> to vector<8x64xf32>
    %58 = vector.extract_strided_slice %11 {offsets = [248, 0], sizes = [8, 64], strides = [1, 1]} : vector<288x64xf32> to vector<8x64xf32>
    %59 = arith.maximumf %57, %58 : vector<8x64xf32>
    %60 = arith.maximumf %56, %59 : vector<8x64xf32>
    %61 = vector.extract_strided_slice %11 {offsets = [208, 0], sizes = [8, 64], strides = [1, 1]} : vector<288x64xf32> to vector<8x64xf32>
    %62 = vector.extract_strided_slice %11 {offsets = [216, 0], sizes = [8, 64], strides = [1, 1]} : vector<288x64xf32> to vector<8x64xf32>
    %63 = arith.maximumf %61, %62 : vector<8x64xf32>
    %64 = vector.extract_strided_slice %11 {offsets = [256, 0], sizes = [8, 64], strides = [1, 1]} : vector<288x64xf32> to vector<8x64xf32>
    %65 = vector.extract_strided_slice %11 {offsets = [264, 0], sizes = [8, 64], strides = [1, 1]} : vector<288x64xf32> to vector<8x64xf32>
    %66 = arith.maximumf %64, %65 : vector<8x64xf32>
    %67 = arith.maximumf %63, %66 : vector<8x64xf32>
    %68 = vector.extract_strided_slice %11 {offsets = [224, 0], sizes = [8, 64], strides = [1, 1]} : vector<288x64xf32> to vector<8x64xf32>
    %69 = vector.extract_strided_slice %11 {offsets = [232, 0], sizes = [8, 64], strides = [1, 1]} : vector<288x64xf32> to vector<8x64xf32>
    %70 = arith.maximumf %68, %69 : vector<8x64xf32>
    %71 = vector.extract_strided_slice %11 {offsets = [272, 0], sizes = [8, 64], strides = [1, 1]} : vector<288x64xf32> to vector<8x64xf32>
    %72 = vector.extract_strided_slice %11 {offsets = [280, 0], sizes = [8, 64], strides = [1, 1]} : vector<288x64xf32> to vector<8x64xf32>
    %73 = arith.maximumf %71, %72 : vector<8x64xf32>
    %74 = arith.maximumf %70, %73 : vector<8x64xf32>
    %75 = tpu.iota {dimensions = array<i32: 0>} : vector<8x1xi32>
    %c2_i32 = arith.constant 2 : i32
    %76 = vector.broadcast %c2_i32 : i32 to vector<8x1xi32>
    %77 = arith.cmpi slt, %75, %76 : vector<8x1xi32>
    %78 = arith.extui %77 : vector<8x1xi1> to vector<8x1xi32>
    %79 = arith.sitofp %78 : vector<8x1xi32> to vector<8x1xf32>
    %cst_11 = arith.constant 0.000000e+00 : f32
    %80 = vector.broadcast %cst_11 : f32 to vector<1x64xf32>
    %cst_12 = arith.constant 0.000000e+00 : f32
    %81 = vector.broadcast %cst_12 : f32 to vector<1x64xf32>
    %82 = vector.broadcast %79 : vector<8x1xf32> to vector<8x64xf32>
    %83 = arith.mulf %18, %82 : vector<8x64xf32>
    %cst_13 = arith.constant dense<0.000000e+00> : vector<64xf32>
    %84 = vector.multi_reduction <add>, %83, %cst_13 [0] : vector<8x64xf32> to vector<64xf32>
    %85 = vector.shape_cast %84 : vector<64xf32> to vector<1x64xf32>
    %86 = arith.addf %80, %85 : vector<1x64xf32>
    %87 = arith.mulf %83, %18 : vector<8x64xf32>
    %cst_14 = arith.constant dense<0.000000e+00> : vector<64xf32>
    %88 = vector.multi_reduction <add>, %87, %cst_14 [0] : vector<8x64xf32> to vector<64xf32>
    %89 = vector.shape_cast %88 : vector<64xf32> to vector<1x64xf32>
    %90 = arith.addf %81, %89 : vector<1x64xf32>
    %91 = vector.broadcast %79 : vector<8x1xf32> to vector<8x64xf32>
    %92 = arith.mulf %25, %91 : vector<8x64xf32>
    %cst_15 = arith.constant dense<0.000000e+00> : vector<64xf32>
    %93 = vector.multi_reduction <add>, %92, %cst_15 [0] : vector<8x64xf32> to vector<64xf32>
    %94 = vector.shape_cast %93 : vector<64xf32> to vector<1x64xf32>
    %95 = arith.addf %86, %94 : vector<1x64xf32>
    %96 = arith.mulf %92, %25 : vector<8x64xf32>
    %cst_16 = arith.constant dense<0.000000e+00> : vector<64xf32>
    %97 = vector.multi_reduction <add>, %96, %cst_16 [0] : vector<8x64xf32> to vector<64xf32>
    %98 = vector.shape_cast %97 : vector<64xf32> to vector<1x64xf32>
    %99 = arith.addf %90, %98 : vector<1x64xf32>
    %100 = vector.broadcast %79 : vector<8x1xf32> to vector<8x64xf32>
    %101 = arith.mulf %32, %100 : vector<8x64xf32>
    %cst_17 = arith.constant dense<0.000000e+00> : vector<64xf32>
    %102 = vector.multi_reduction <add>, %101, %cst_17 [0] : vector<8x64xf32> to vector<64xf32>
    %103 = vector.shape_cast %102 : vector<64xf32> to vector<1x64xf32>
    %104 = arith.addf %95, %103 : vector<1x64xf32>
    %105 = arith.mulf %101, %32 : vector<8x64xf32>
    %cst_18 = arith.constant dense<0.000000e+00> : vector<64xf32>
    %106 = vector.multi_reduction <add>, %105, %cst_18 [0] : vector<8x64xf32> to vector<64xf32>
    %107 = vector.shape_cast %106 : vector<64xf32> to vector<1x64xf32>
    %108 = arith.addf %99, %107 : vector<1x64xf32>
    %109 = vector.broadcast %79 : vector<8x1xf32> to vector<8x64xf32>
    %110 = arith.mulf %39, %109 : vector<8x64xf32>
    %cst_19 = arith.constant dense<0.000000e+00> : vector<64xf32>
    %111 = vector.multi_reduction <add>, %110, %cst_19 [0] : vector<8x64xf32> to vector<64xf32>
    %112 = vector.shape_cast %111 : vector<64xf32> to vector<1x64xf32>
    %113 = arith.addf %104, %112 : vector<1x64xf32>
    %114 = arith.mulf %110, %39 : vector<8x64xf32>
    %cst_20 = arith.constant dense<0.000000e+00> : vector<64xf32>
    %115 = vector.multi_reduction <add>, %114, %cst_20 [0] : vector<8x64xf32> to vector<64xf32>
    %116 = vector.shape_cast %115 : vector<64xf32> to vector<1x64xf32>
    %117 = arith.addf %108, %116 : vector<1x64xf32>
    %118 = vector.broadcast %79 : vector<8x1xf32> to vector<8x64xf32>
    %119 = arith.mulf %46, %118 : vector<8x64xf32>
    %cst_21 = arith.constant dense<0.000000e+00> : vector<64xf32>
    %120 = vector.multi_reduction <add>, %119, %cst_21 [0] : vector<8x64xf32> to vector<64xf32>
    %121 = vector.shape_cast %120 : vector<64xf32> to vector<1x64xf32>
    %122 = arith.addf %113, %121 : vector<1x64xf32>
    %123 = arith.mulf %119, %46 : vector<8x64xf32>
    %cst_22 = arith.constant dense<0.000000e+00> : vector<64xf32>
    %124 = vector.multi_reduction <add>, %123, %cst_22 [0] : vector<8x64xf32> to vector<64xf32>
    %125 = vector.shape_cast %124 : vector<64xf32> to vector<1x64xf32>
    %126 = arith.addf %117, %125 : vector<1x64xf32>
    %127 = vector.broadcast %79 : vector<8x1xf32> to vector<8x64xf32>
    %128 = arith.mulf %53, %127 : vector<8x64xf32>
    %cst_23 = arith.constant dense<0.000000e+00> : vector<64xf32>
    %129 = vector.multi_reduction <add>, %128, %cst_23 [0] : vector<8x64xf32> to vector<64xf32>
    %130 = vector.shape_cast %129 : vector<64xf32> to vector<1x64xf32>
    %131 = arith.addf %122, %130 : vector<1x64xf32>
    %132 = arith.mulf %128, %53 : vector<8x64xf32>
    %cst_24 = arith.constant dense<0.000000e+00> : vector<64xf32>
    %133 = vector.multi_reduction <add>, %132, %cst_24 [0] : vector<8x64xf32> to vector<64xf32>
    %134 = vector.shape_cast %133 : vector<64xf32> to vector<1x64xf32>
    %135 = arith.addf %126, %134 : vector<1x64xf32>
    %136 = vector.broadcast %79 : vector<8x1xf32> to vector<8x64xf32>
    %137 = arith.mulf %60, %136 : vector<8x64xf32>
    %cst_25 = arith.constant dense<0.000000e+00> : vector<64xf32>
    %138 = vector.multi_reduction <add>, %137, %cst_25 [0] : vector<8x64xf32> to vector<64xf32>
    %139 = vector.shape_cast %138 : vector<64xf32> to vector<1x64xf32>
    %140 = arith.addf %131, %139 : vector<1x64xf32>
    %141 = arith.mulf %137, %60 : vector<8x64xf32>
    %cst_26 = arith.constant dense<0.000000e+00> : vector<64xf32>
    %142 = vector.multi_reduction <add>, %141, %cst_26 [0] : vector<8x64xf32> to vector<64xf32>
    %143 = vector.shape_cast %142 : vector<64xf32> to vector<1x64xf32>
    %144 = arith.addf %135, %143 : vector<1x64xf32>
    %145 = vector.broadcast %79 : vector<8x1xf32> to vector<8x64xf32>
    %146 = arith.mulf %67, %145 : vector<8x64xf32>
    %cst_27 = arith.constant dense<0.000000e+00> : vector<64xf32>
    %147 = vector.multi_reduction <add>, %146, %cst_27 [0] : vector<8x64xf32> to vector<64xf32>
    %148 = vector.shape_cast %147 : vector<64xf32> to vector<1x64xf32>
    %149 = arith.addf %140, %148 : vector<1x64xf32>
    %150 = arith.mulf %146, %67 : vector<8x64xf32>
    %cst_28 = arith.constant dense<0.000000e+00> : vector<64xf32>
    %151 = vector.multi_reduction <add>, %150, %cst_28 [0] : vector<8x64xf32> to vector<64xf32>
    %152 = vector.shape_cast %151 : vector<64xf32> to vector<1x64xf32>
    %153 = arith.addf %144, %152 : vector<1x64xf32>
    %154 = vector.broadcast %79 : vector<8x1xf32> to vector<8x64xf32>
    %155 = arith.mulf %74, %154 : vector<8x64xf32>
    %cst_29 = arith.constant dense<0.000000e+00> : vector<64xf32>
    %156 = vector.multi_reduction <add>, %155, %cst_29 [0] : vector<8x64xf32> to vector<64xf32>
    %157 = vector.shape_cast %156 : vector<64xf32> to vector<1x64xf32>
    %158 = arith.addf %149, %157 : vector<1x64xf32>
    %159 = arith.mulf %155, %74 : vector<8x64xf32>
    %cst_30 = arith.constant dense<0.000000e+00> : vector<64xf32>
    %160 = vector.multi_reduction <add>, %159, %cst_30 [0] : vector<8x64xf32> to vector<64xf32>
    %161 = vector.shape_cast %160 : vector<64xf32> to vector<1x64xf32>
    %162 = arith.addf %153, %161 : vector<1x64xf32>
    %cst_31 = arith.constant 1.800000e+01 : f32
    %163 = vector.broadcast %cst_31 : f32 to vector<1x64xf32>
    %164 = arith.divf %158, %163 : vector<1x64xf32>
    %cst_32 = arith.constant 1.800000e+01 : f32
    %165 = vector.broadcast %cst_32 : f32 to vector<1x64xf32>
    %166 = arith.divf %162, %165 : vector<1x64xf32>
    %167 = arith.mulf %164, %164 : vector<1x64xf32>
    %168 = arith.subf %166, %167 : vector<1x64xf32>
    %cst_33 = arith.constant 0.000000e+00 : f32
    %169 = vector.broadcast %cst_33 : f32 to vector<1x64xf32>
    %170 = arith.maximumf %168, %169 : vector<1x64xf32>
    %c1 = arith.constant 1 : index
    %c0_34 = arith.constant 0 : index
    %171 = vector.load %arg4[%c1, %c0_34] : memref<10x128xf32, #tpu.memory_space<vmem>>, vector<1x64xf32>
    %cst_35 = arith.constant 9.99999974E-6 : f32
    %172 = vector.broadcast %cst_35 : f32 to vector<1x64xf32>
    %173 = arith.addf %170, %172 : vector<1x64xf32>
    %174 = math.rsqrt %173 : vector<1x64xf32>
    %175 = arith.mulf %171, %174 : vector<1x64xf32>
    %c2 = arith.constant 2 : index
    %c0_36 = arith.constant 0 : index
    %176 = vector.load %arg4[%c2, %c0_36] : memref<10x128xf32, #tpu.memory_space<vmem>>, vector<1x64xf32>
    %177 = arith.mulf %164, %175 : vector<1x64xf32>
    %178 = arith.subf %176, %177 : vector<1x64xf32>
    %179 = vector.broadcast %175 : vector<1x64xf32> to vector<8x64xf32>
    %180 = arith.mulf %18, %179 : vector<8x64xf32>
    %181 = vector.broadcast %178 : vector<1x64xf32> to vector<8x64xf32>
    %182 = arith.addf %180, %181 : vector<8x64xf32>
    %183 = arith.truncf %182 : vector<8x64xf32> to vector<8x64xbf16>
    %184 = vector.broadcast %175 : vector<1x64xf32> to vector<8x64xf32>
    %185 = arith.mulf %25, %184 : vector<8x64xf32>
    %186 = vector.broadcast %178 : vector<1x64xf32> to vector<8x64xf32>
    %187 = arith.addf %185, %186 : vector<8x64xf32>
    %188 = arith.truncf %187 : vector<8x64xf32> to vector<8x64xbf16>
    %189 = vector.broadcast %175 : vector<1x64xf32> to vector<8x64xf32>
    %190 = arith.mulf %32, %189 : vector<8x64xf32>
    %191 = vector.broadcast %178 : vector<1x64xf32> to vector<8x64xf32>
    %192 = arith.addf %190, %191 : vector<8x64xf32>
    %193 = arith.truncf %192 : vector<8x64xf32> to vector<8x64xbf16>
    %194 = vector.broadcast %175 : vector<1x64xf32> to vector<8x64xf32>
    %195 = arith.mulf %39, %194 : vector<8x64xf32>
    %196 = vector.broadcast %178 : vector<1x64xf32> to vector<8x64xf32>
    %197 = arith.addf %195, %196 : vector<8x64xf32>
    %198 = arith.truncf %197 : vector<8x64xf32> to vector<8x64xbf16>
    %199 = vector.broadcast %175 : vector<1x64xf32> to vector<8x64xf32>
    %200 = arith.mulf %46, %199 : vector<8x64xf32>
    %201 = vector.broadcast %178 : vector<1x64xf32> to vector<8x64xf32>
    %202 = arith.addf %200, %201 : vector<8x64xf32>
    %203 = arith.truncf %202 : vector<8x64xf32> to vector<8x64xbf16>
    %204 = vector.broadcast %175 : vector<1x64xf32> to vector<8x64xf32>
    %205 = arith.mulf %53, %204 : vector<8x64xf32>
    %206 = vector.broadcast %178 : vector<1x64xf32> to vector<8x64xf32>
    %207 = arith.addf %205, %206 : vector<8x64xf32>
    %208 = arith.truncf %207 : vector<8x64xf32> to vector<8x64xbf16>
    %209 = vector.broadcast %175 : vector<1x64xf32> to vector<8x64xf32>
    %210 = arith.mulf %60, %209 : vector<8x64xf32>
    %211 = vector.broadcast %178 : vector<1x64xf32> to vector<8x64xf32>
    %212 = arith.addf %210, %211 : vector<8x64xf32>
    %213 = arith.truncf %212 : vector<8x64xf32> to vector<8x64xbf16>
    %214 = vector.broadcast %175 : vector<1x64xf32> to vector<8x64xf32>
    %215 = arith.mulf %67, %214 : vector<8x64xf32>
    %216 = vector.broadcast %178 : vector<1x64xf32> to vector<8x64xf32>
    %217 = arith.addf %215, %216 : vector<8x64xf32>
    %218 = arith.truncf %217 : vector<8x64xf32> to vector<8x64xbf16>
    %219 = vector.broadcast %175 : vector<1x64xf32> to vector<8x64xf32>
    %220 = arith.mulf %74, %219 : vector<8x64xf32>
    %221 = vector.broadcast %178 : vector<1x64xf32> to vector<8x64xf32>
    %222 = arith.addf %220, %221 : vector<8x64xf32>
    %223 = arith.truncf %222 : vector<8x64xf32> to vector<8x64xbf16>
    %224 = tpu.concatenate %183, %188, %193, %198, %203, %208, %213, %218, %223 in 1 : vector<8x64xbf16>, vector<8x64xbf16>, vector<8x64xbf16>, vector<8x64xbf16>, vector<8x64xbf16>, vector<8x64xbf16>, vector<8x64xbf16>, vector<8x64xbf16>, vector<8x64xbf16> -> vector<8x576xbf16>
    %c64 = arith.constant 64 : index
    %c0_37 = arith.constant 0 : index
    %225 = vector.load %arg2[%c64, %c0_37] : memref<1472x128xbf16, #tpu.memory_space<vmem>>, vector<576x128xbf16>
    %cst_38 = arith.constant dense<0.000000e+00> : vector<8x128xf32>
    %226 = tpu.matmul %224, %225, %cst_38 {dimension_numbers = #tpu.dot_dimension_numbers<[1], [0], [0], [1], [0, 0, 1, 1], [], []>} : vector<8x576xbf16>, vector<576x128xbf16>, vector<8x128xf32> -> vector<8x128xf32>
    %c4 = arith.constant 4 : index
    %c0_39 = arith.constant 0 : index
    %227 = vector.load %arg4[%c4, %c0_39] : memref<10x128xf32, #tpu.memory_space<vmem>>, vector<1x128xf32>
    %228 = vector.broadcast %227 : vector<1x128xf32> to vector<8x128xf32>
    %229 = arith.addf %226, %228 : vector<8x128xf32>
    %230 = tpu.concatenate %183, %188, %198, %203 in 1 : vector<8x64xbf16>, vector<8x64xbf16>, vector<8x64xbf16>, vector<8x64xbf16> -> vector<8x256xbf16>
    %231 = tpu.concatenate %188, %193, %203, %208 in 1 : vector<8x64xbf16>, vector<8x64xbf16>, vector<8x64xbf16>, vector<8x64xbf16> -> vector<8x256xbf16>
    %232 = tpu.concatenate %198, %203, %213, %218 in 1 : vector<8x64xbf16>, vector<8x64xbf16>, vector<8x64xbf16>, vector<8x64xbf16> -> vector<8x256xbf16>
    %233 = tpu.concatenate %203, %208, %218, %223 in 1 : vector<8x64xbf16>, vector<8x64xbf16>, vector<8x64xbf16>, vector<8x64xbf16> -> vector<8x256xbf16>
    %234 = tpu.concatenate %230, %231, %232, %233 in 0 : vector<8x256xbf16>, vector<8x256xbf16>, vector<8x256xbf16>, vector<8x256xbf16> -> vector<32x256xbf16>
    %c640 = arith.constant 640 : index
    %c0_40 = arith.constant 0 : index
    %235 = vector.load %arg2[%c640, %c0_40] : memref<1472x128xbf16, #tpu.memory_space<vmem>>, vector<256x128xbf16>
    %cst_41 = arith.constant dense<0.000000e+00> : vector<32x128xf32>
    %236 = tpu.matmul %234, %235, %cst_41 {dimension_numbers = #tpu.dot_dimension_numbers<[1], [0], [0], [1], [0, 0, 1, 1], [], []>} : vector<32x256xbf16>, vector<256x128xbf16>, vector<32x128xf32> -> vector<32x128xf32>
    %c5 = arith.constant 5 : index
    %c0_42 = arith.constant 0 : index
    %237 = vector.load %arg4[%c5, %c0_42] : memref<10x128xf32, #tpu.memory_space<vmem>>, vector<1x128xf32>
    %238 = vector.broadcast %237 : vector<1x128xf32> to vector<32x128xf32>
    %239 = arith.addf %236, %238 : vector<32x128xf32>
    %240 = vector.extract_strided_slice %239 {offsets = [0, 0], sizes = [8, 128], strides = [1, 1]} : vector<32x128xf32> to vector<8x128xf32>
    %241 = vector.extract_strided_slice %239 {offsets = [8, 0], sizes = [8, 128], strides = [1, 1]} : vector<32x128xf32> to vector<8x128xf32>
    %242 = arith.maximumf %240, %241 : vector<8x128xf32>
    %243 = vector.extract_strided_slice %239 {offsets = [16, 0], sizes = [8, 128], strides = [1, 1]} : vector<32x128xf32> to vector<8x128xf32>
    %244 = vector.extract_strided_slice %239 {offsets = [24, 0], sizes = [8, 128], strides = [1, 1]} : vector<32x128xf32> to vector<8x128xf32>
    %245 = arith.maximumf %243, %244 : vector<8x128xf32>
    %246 = arith.maximumf %242, %245 : vector<8x128xf32>
    %247 = arith.truncf %246 : vector<8x128xf32> to vector<8x128xbf16>
    %c896 = arith.constant 896 : index
    %c0_43 = arith.constant 0 : index
    %248 = vector.load %arg2[%c896, %c0_43] : memref<1472x128xbf16, #tpu.memory_space<vmem>>, vector<128x128xbf16>
    %cst_44 = arith.constant dense<0.000000e+00> : vector<8x128xf32>
    %249 = tpu.matmul %247, %248, %cst_44 {dimension_numbers = #tpu.dot_dimension_numbers<[1], [0], [0], [1], [0, 0, 1, 1], [], []>} : vector<8x128xbf16>, vector<128x128xbf16>, vector<8x128xf32> -> vector<8x128xf32>
    %c6 = arith.constant 6 : index
    %c0_45 = arith.constant 0 : index
    %250 = vector.load %arg4[%c6, %c0_45] : memref<10x128xf32, #tpu.memory_space<vmem>>, vector<1x128xf32>
    %251 = vector.broadcast %250 : vector<1x128xf32> to vector<8x128xf32>
    %252 = arith.addf %249, %251 : vector<8x128xf32>
    %253 = arith.addf %252, %5 : vector<8x128xf32>
    %254 = arith.addf %253, %229 : vector<8x128xf32>
    %255 = tpu.concatenate %254, %5, %229 in 1 : vector<8x128xf32>, vector<8x128xf32>, vector<8x128xf32> -> vector<8x384xf32>
    %256 = arith.truncf %255 : vector<8x384xf32> to vector<8x384xbf16>
    %c1024 = arith.constant 1024 : index
    %c0_46 = arith.constant 0 : index
    %257 = vector.load %arg2[%c1024, %c0_46] : memref<1472x128xbf16, #tpu.memory_space<vmem>>, vector<384x128xbf16>
    %cst_47 = arith.constant dense<0.000000e+00> : vector<8x128xf32>
    %258 = tpu.matmul %256, %257, %cst_47 {dimension_numbers = #tpu.dot_dimension_numbers<[1], [0], [0], [1], [0, 0, 1, 1], [], []>} : vector<8x384xbf16>, vector<384x128xbf16>, vector<8x128xf32> -> vector<8x128xf32>
    %c7 = arith.constant 7 : index
    %c0_48 = arith.constant 0 : index
    %259 = vector.load %arg4[%c7, %c0_48] : memref<10x128xf32, #tpu.memory_space<vmem>>, vector<1x128xf32>
    %260 = vector.broadcast %259 : vector<1x128xf32> to vector<8x128xf32>
    %261 = arith.addf %258, %260 : vector<8x128xf32>
    %cst_49 = arith.constant 0.000000e+00 : f32
    %262 = vector.broadcast %cst_49 : f32 to vector<8x128xf32>
    %263 = arith.maximumf %261, %262 : vector<8x128xf32>
    %264 = arith.truncf %263 : vector<8x128xf32> to vector<8x128xbf16>
    %c16 = arith.constant 16 : index
    %c0_50 = arith.constant 0 : index
    %265 = vector.load %arg3[%c16, %c0_50] : memref<144x64xbf16, #tpu.memory_space<vmem>>, vector<128x64xbf16>
    %cst_51 = arith.constant dense<0.000000e+00> : vector<8x64xf32>
    %266 = tpu.matmul %264, %265, %cst_51 {dimension_numbers = #tpu.dot_dimension_numbers<[1], [0], [0], [1], [0, 0, 1, 1], [], []>} : vector<8x128xbf16>, vector<128x64xbf16>, vector<8x64xf32> -> vector<8x64xf32>
    %c8 = arith.constant 8 : index
    %c0_52 = arith.constant 0 : index
    %267 = vector.load %arg4[%c8, %c0_52] : memref<10x128xf32, #tpu.memory_space<vmem>>, vector<1x64xf32>
    %268 = vector.broadcast %267 : vector<1x64xf32> to vector<8x64xf32>
    %269 = arith.addf %266, %268 : vector<8x64xf32>
    %cst_53 = arith.constant 0.000000e+00 : f32
    %270 = vector.broadcast %cst_53 : f32 to vector<8x64xf32>
    %271 = arith.maximumf %269, %270 : vector<8x64xf32>
    %272 = arith.truncf %271 : vector<8x64xf32> to vector<8x64xbf16>
    %c1408 = arith.constant 1408 : index
    %c0_54 = arith.constant 0 : index
    %273 = vector.load %arg2[%c1408, %c0_54] : memref<1472x128xbf16, #tpu.memory_space<vmem>>, vector<64x128xbf16>
    %cst_55 = arith.constant dense<0.000000e+00> : vector<8x128xf32>
    %274 = tpu.matmul %272, %273, %cst_55 {dimension_numbers = #tpu.dot_dimension_numbers<[1], [0], [0], [1], [0, 0, 1, 1], [], []>} : vector<8x64xbf16>, vector<64x128xbf16>, vector<8x128xf32> -> vector<8x128xf32>
    %c9 = arith.constant 9 : index
    %c0_56 = arith.constant 0 : index
    %275 = vector.load %arg4[%c9, %c0_56] : memref<10x128xf32, #tpu.memory_space<vmem>>, vector<1x128xf32>
    %276 = vector.broadcast %275 : vector<1x128xf32> to vector<8x128xf32>
    %277 = arith.addf %274, %276 : vector<8x128xf32>
    %c0_57 = arith.constant 0 : index
    %c0_58 = arith.constant 0 : index
    %278 = vector.load %arg5[%c0_57, %c0_58] : memref<8x128xf32, #tpu.memory_space<vmem>>, vector<8x128xf32>
    tpu.vector_store %arg5[%c0_57, %c0_58], %277 {strides = array<i32>} : memref<8x128xf32, #tpu.memory_space<vmem>>, vector<8x128xf32>,
    return
  }
}

</mosaic_0001>

<bundles_post_ra>
// kernel: skipnet_forward.1
= control target key start
LH: loop header
LB: loop body
LE: loop exit
PB: predicated region body
PF: predicated region fallthrough
CT: control target
= control target key end

     0   :  { %vm296_vm0 = vcmask 1043456   ;;  %vm297_vm1 = vcmask 1044480   ;;  %vm241_vm2 = vcmask 72704   ;;  %v2537_v1 = vmov 65535   ;;  %s2540_s30 = smov 64   ;;  %s3215_s3 = inlined_call_operand.vmem [shape: bf16[144,64], index: 3, kind: input, shape index: {}]   ;;  %s3216_s0 = inlined_call_operand.vmem [shape: bf16[288,9], index: 0, kind: input, shape index: {}]   ;;  %s3217_s4 = inlined_call_operand.vmem [shape: f32[10,128], index: 4, kind: input, shape index: {}]   ;;  %s3218_s2 = inlined_call_operand.vmem [shape: bf16[1472,128], index: 2, kind: input, shape index: {}]   ;;  %s3219_s1 = inlined_call_operand.vmem [shape: bf16[8,64], index: 1, kind: input, shape index: {}]   ;;  %s3220_s5 = inlined_call_operand.vmem [shape: f32[8,128], index: 5, kind: output, shape index: {}]  }
   0x1   :  { %v2416_v0 = vld [vmem:[%s3215_s3] sm:$0x1f]   ;;  %v298_v2 = vsel %vm296_vm0, 4294967295, %v2537_v1  ;;  %v2418_v6 = vld [vmem:[%s3216_s0 + $0x8] sm:$0xff]   ;;  %v2419_v7 = vld [vmem:[%s3216_s0 + $0x10] sm:$0xff]   ;;  %v2538_v23 = vmov 0.0   ;;  %v507_v31 = vlaneseq }
   0x2   :  { %v2417_v3 = vld [vmem:[%s3216_s0] sm:$0xff]   ;;  %v299_v4 = vsel %vm297_vm1, %v298_v2, 0  ;;  %v2420_v8 = vld [vmem:[%s3216_s0 + $0x18] sm:$0xff]   ;;  %v2422_v10 = vld [vmem:[%s3216_s0 + $0x28] sm:$0xff]   ;;  %2278 = vmatprep.subr.bf16.mxu0 %v2538_v23  ;;  %vm2539_vm4 = vmmov 0   ;;  %vm59_vm5 = vcmask 523264  }
   0x3   :  { %v301_v5 = vand.u32 %v2416_v0, %v299_v4  ;;  %2292 = vmatprep.mubr.msk.bf16.mxu1 %vm241_vm2, %v2417_v3  ;;  %v2421_v9 = vld [vmem:[%s3216_s0 + $0x20] sm:$0xff]   ;;  %v2423_v11 = vld [vmem:[%s3216_s0 + $0x30] sm:$0xff]   ;;  %v2424_v12 = vld [vmem:[%s3216_s0 + $0x38] sm:$0xff]   ;;  %v2657_v36 = vshrl.u32 %v507_v31, 7  ;;  %2286 = vmatprep.mubr.msk.bf16.mxu0 %vm2539_vm4, %v2538_v23 }
   0x4   :  { %v2425_v13 = vld [vmem:[%s3216_s0 + $0x40] sm:$0xff]   ;;  %v2426_v14 = vld [vmem:[%s3216_s0 + $0x48] sm:$0xff]   ;;  %v2427_v15 = vld [vmem:[%s3216_s0 + $0x50] sm:$0xff]  }
   0x5   :  { %2290 = vmatprep.subr.bf16.mxu1 %v301_v5  ;;  %v2428_v16 = vld [vmem:[%s3216_s0 + $0x58] sm:$0xff]   ;;  %v2429_v17 = vld [vmem:[%s3216_s0 + $0x60] sm:$0xff]   ;;  %v2430_v18 = vld [vmem:[%s3216_s0 + $0x68] sm:$0xff]   ;;  %vm509_vm3 = vcmp.lt.s32.totalorder %v2657_v36, 2 }
   0x6   :  { %2291 = vmatpush3.bf16.msra.mxu1 %v301_v5  ;;  %v2431_v19 = vld [vmem:[%s3216_s0 + $0x70] sm:$0xff]   ;;  %v2432_v20 = vld [vmem:[%s3216_s0 + $0x78] sm:$0xff]   ;;  %v2433_v21 = vld [vmem:[%s3216_s0 + $0x80] sm:$0xff]   ;;  %v2670_v47 = vsel %vm509_vm3, 1.0, %v2538_v23 }
   0x7   :  { %v2434_v22 = vld [vmem:[%s3216_s0 + $0x88] sm:$0xff]   ;;  %v2651_v25 = vld [vmem:[%s3217_s4] ss:$0 sm:$0xff]  ;;  %v2437_v55 = vld [vmem:[%s3218_s2 + $0x10] sm:$0xff]  }
   0x8   :  { %v2435_v45 = vld [vmem:[%s3218_s2] sm:$0xff]   ;;  %v2436_v49 = vld [vmem:[%s3218_s2 + $0x8] sm:$0xff]   ;;  %v2438_v2 = vld [vmem:[%s3218_s2 + $0x18] sm:$0xff]  }
   0x9   :  { %2293 = vmatmul.mubr.msk.bf16.vlgmr.msra.gmra.mrb[0].mxu1 %vm241_vm2, %v2418_v6  ;;  %2279 = vmatpush3.bf16.msra.mxu0 %v2435_v45  ;;  %v2439_v6 = vld [vmem:[%s3218_s2 + $0x60] sm:$0xff]  }
   0xa   :  { %2296 = vmatprep.mubr.msk.bf16.mxu1 %vm241_vm2, %v2419_v7  ;;  %2280 = vmatprep.subr.bf16.mxu0 %v2538_v23 }
   0xd   :  { %2281 = vmatpush3.bf16.msra.mxu0 %v2436_v49 }
   0xe   :  { %2282 = vmatprep.subr.bf16.mxu0 %v2538_v23 }
  0x11   :  { %2297 = vmatmul.mubr.msk.bf16.gmra.mrb[4].mxu1 %vm241_vm2, %v2420_v8  ;;  %2283 = vmatpush3.bf16.msra.mxu0 %v2437_v55  ;;  %v2445_v8 = vld [vmem:[%s3218_s2 + $0xe0] sm:$0xff]   ;;  %v2444_v55 = vld [vmem:[%s3218_s2 + $0x30] sm:$0xff]  }
  0x12   :  { %2300 = vmatprep.mubr.msk.bf16.mxu1 %vm241_vm2, %v2421_v9  ;;  %2284 = vmatprep.subr.bf16.mxu0 %v2538_v23 }
  0x13   :  { %2169 = vmatprep.subr.bf16.mxu1 %v2445_v8  ;;  %v2447_v8 = vld [vmem:[%s3218_s2 + $0x78] sm:$0xff]  }
  0x15   :  { %2285 = vmatpush3.bf16.msra.mxu0 %v2438_v2 }
  0x16   :  { %2147 = vmatprep.subr.bf16.mxu0 %v2439_v6 }
  0x19   :  { %2301 = vmatmul.mubr.msk.bf16.gmra.mrb[8].mxu1 %vm241_vm2, %v2422_v10 }
  0x1a   :  { %2304 = vmatprep.mubr.msk.bf16.mxu1 %vm241_vm2, %v2423_v11 }
  0x21   :  { %2305 = vmatmul.mubr.msk.bf16.gmra.mrb[12].mxu1 %vm241_vm2, %v2424_v12 }
  0x22   :  { %2308 = vmatprep.mubr.msk.bf16.mxu1 %vm241_vm2, %v2425_v13  ;;  %v21_v13 = vld [vmem:[%s3219_s1] sm:$0xf] }
  0x23   :  { %2287 = vmatmul.mubr.msk.bf16.vlgmr.msra.gmra.mrb[0].mxu0 %vm59_vm5, %v21_v13 }
  0x29   :  { %2309 = vmatmul.mubr.msk.bf16.gmra.mrb[16].mxu1 %vm241_vm2, %v2426_v14  ;;  %v2440_v14 = vld [vmem:[%s3218_s2 + $0x20] sm:$0xff]  }
  0x2a   :  { %2312 = vmatprep.mubr.msk.bf16.mxu1 %vm241_vm2, %v2427_v15  ;;  %v2446_v15 = vld [vmem:[%s3218_s2 + $0xa0] sm:$0xff]   ;;  %2148 = vmatpush3.bf16.msra.mxu0 %v2440_v14  ;;  %v2448_v14 = vld [vmem:[%s3218_s2 + $0x38] sm:$0xff]  }
  0x2b   :  { %2170 = vmatpush3.bf16.msra.mxu1 %v2446_v15 }
  0x31   :  { %2313 = vmatmul.mubr.msk.bf16.gmra.mrb[20].mxu1 %vm241_vm2, %v2428_v16 }
  0x32   :  { %2316 = vmatprep.mubr.msk.bf16.mxu1 %vm241_vm2, %v2429_v17 }
  0x39   :  { %2317 = vmatmul.mubr.msk.bf16.gmra.mrb[24].mxu1 %vm241_vm2, %v2430_v18  ;;  %v2441_v18 = vld [vmem:[%s3218_s2 + $0x68] sm:$0xff]  }
  0x3a   :  { %2320 = vmatprep.mubr.msk.bf16.mxu1 %vm241_vm2, %v2431_v19  ;;  %2149 = vmatprep.subr.bf16.mxu0 %v2441_v18 }
  0x41   :  { %2321 = vmatmul.mubr.msk.bf16.gmra.mrb[28].mxu1 %vm241_vm2, %v2432_v20 }
  0x42   :  { %2324 = vmatprep.mubr.msk.bf16.mxu1 %vm241_vm2, %v2433_v21 }
  0x49   :  { %2325 = vmatmul.mubr.msk.bf16.gmra.mrb[32].mxu1 %vm241_vm2, %v2434_v22 }
  0xdc   :  { %v2294_v24 = vpop.f32.mrb[0].mxu1 }
  0xdd   :  { %v337_v26 = vpop.f32.mrb[1].mxu1  ;;  %v346_v28 = vadd.f32 %v2294_v24, %v2651_v25 }
  0xde   :  { %v2295_v27 = vpop.f32.mrb[2].mxu1  ;;  %v338_v32 = vadd.f32 %v2651_v25, %v337_v26 }
  0xdf   :  { %v349_v29 = vadd.f32 %v2295_v27, %v2651_v25  ;;  %v340_v30 = vpop.f32.mrb[3].mxu1 }
  0xe0   :  { %v341_v33 = vadd.f32 %v2651_v25, %v340_v30 }
  0xe1   :  { %v483_v34 = vmax.f32 %v346_v28, %v349_v29 }
  0xe2   :  { %v480_v35 = vmax.f32 %v338_v32, %v341_v33  ;;  %v2449_v32 = vld [vmem:[%s3218_s2 + $0xe8] sm:$0xff]  }
  0xe3   :  { %2171 = vmatprep.subr.bf16.mxu1 %v2449_v32 }
  0xe4   :  { %v2298_v37 = vpop.f32.mrb[4].mxu1 }
  0xe5   :  { %v353_v38 = vpop.f32.mrb[5].mxu1  ;;  %v362_v40 = vadd.f32 %v2298_v37, %v2651_v25 }
  0xe6   :  { %v2299_v39 = vpop.f32.mrb[6].mxu1  ;;  %v354_v43 = vadd.f32 %v2651_v25, %v353_v38  ;;  %v2442_v38 = vld [vmem:[%s3218_s2 + $0x28] sm:$0xff]  }
  0xe7   :  { %v365_v41 = vadd.f32 %v2299_v39, %v2651_v25  ;;  %v356_v42 = vpop.f32.mrb[7].mxu1  ;;  %v2450_v39 = vld [vmem:[%s3218_s2 + $0xa8] sm:$0xff]   ;;  %2150 = vmatpush3.bf16.msra.mxu0 %v2442_v38 }
  0xe8   :  { %v357_v44 = vadd.f32 %v2651_v25, %v356_v42  ;;  %2172 = vmatpush3.bf16.msra.mxu1 %v2450_v39 }
  0xe9   :  { %v481_v46 = vmax.f32 %v362_v40, %v365_v41 }
  0xea   :  { %v486_v48 = vmax.f32 %v354_v43, %v357_v44  ;;  %v2443_v44 = vld [vmem:[%s3218_s2 + $0x70] sm:$0xff]  }
  0xeb   :  { %v2675_v50 = vmax.f32 %v480_v35, %v481_v46  ;;  %2151 = vmatprep.subr.bf16.mxu0 %v2443_v44 }
  0xec   :  { %v2302_v51 = vpop.f32.mrb[8].mxu1  ;;  %2152 = vmatpush3.bf16.msra.mxu0 %v2444_v55 }
  0xed   :  { %v512_v52 = vmul.f32 %v2670_v47, %v2675_v50  ;;  %v369_v53 = vpop.f32.mrb[9].mxu1  ;;  %v378_v58 = vadd.f32 %v2302_v51, %v2651_v25  ;;  %2153 = vmatprep.subr.bf16.mxu0 %v2447_v8 }
  0xee   :  { %v2303_v54 = vpop.f32.mrb[10].mxu1  ;;  %v370_v62 = vadd.f32 %v2651_v25, %v369_v53 }
  0xef   :  { %v513_v56 = vsel %vm59_vm5, %v512_v52, 0.0  ;;  %v521_v57 = vmul.f32 %v512_v52, %v2675_v50  ;;  %v381_v59 = vadd.f32 %v2303_v54, %v2651_v25  ;;  %v372_v60 = vpop.f32.mrb[11].mxu1 }
  0xf0   :  { %v514_v61 = vrot.slane %v513_v56, 4  ;;  %v373_v63 = vadd.f32 %v2651_v25, %v372_v60  ;;  %2154 = vmatpush3.bf16.msra.mxu0 %v2448_v14 }
  0xf1   :  { %v522_v0 = vsel %vm59_vm5, %v521_v57, 0.0  ;;  %v487_v1 = vmax.f32 %v378_v58, %v381_v59 }
  0xf2   :  { %v515_v3 = vadd.f32 %v514_v61, %v513_v56  ;;  %v523_v4 = vrot.slane %v522_v0, 4  ;;  %v484_v5 = vmax.f32 %v370_v62, %v373_v63  ;;  %v2453_v56 = vld [vmem:[%s3218_s2 + $0xf0] sm:$0xff]  }
  0xf3   :  { %v2697_v7 = vmax.f32 %v486_v48, %v487_v1  ;;  %2173 = vmatprep.subr.bf16.mxu1 %v2453_v56  ;;  %v2454_v1 = vld [vmem:[%s3218_s2 + $0xb0] sm:$0xff]  }
  0xf4   :  { %v516_v9 = vrot.slane %v515_v3, 2  ;;  %v524_v10 = vadd.f32 %v523_v4, %v522_v0  ;;  %v2703_v11 = vmax.f32 %v483_v34, %v484_v5  ;;  %v2306_v12 = vpop.f32.mrb[12].mxu1  ;;  %2174 = vmatpush3.bf16.msra.mxu1 %v2454_v1  ;;  %v2459_v1 = vld [vmem:[%s3218_s2 + $0x90] sm:$0xff]  }
  0xf5   :  { %v548_v16 = vmul.f32 %v2670_v47, %v2697_v7  ;;  %v385_v17 = vpop.f32.mrb[13].mxu1  ;;  %v2722_v21 = vadd.f32 %v2306_v12, %v2651_v25 }
  0xf6   :  { %v525_v19 = vrot.slane %v524_v10, 2  ;;  %v530_v20 = vmul.f32 %v2670_v47, %v2703_v11  ;;  %v2307_v22 = vpop.f32.mrb[14].mxu1  ;;  %v2724_v24 = vadd.f32 %v516_v9, %v515_v3  ;;  %v386_v43 = vadd.f32 %v2651_v25, %v385_v17  ;;  %v2457_v17 = vld [vmem:[%s3218_s2 + $0xf8] sm:$0xff]  }
  0xf7   :  { %v549_v26 = vsel %vm59_vm5, %v548_v16, 0.0  ;;  %v557_v27 = vmul.f32 %v548_v16, %v2697_v7  ;;  %v2729_v28 = vadd.f32 %v2307_v22, %v2651_v25  ;;  %v388_v29 = vpop.f32.mrb[15].mxu1  ;;  %v2458_v22 = vld [vmem:[%s3218_s2 + $0xb8] sm:$0xff]   ;;  %2175 = vmatprep.subr.bf16.mxu1 %v2457_v17 }
  0xf8   :  { %v550_v30 = vrot.slane %v549_v26, 4  ;;  %v531_v31 = vsel %vm59_vm5, %v530_v20, 0.0  ;;  %v539_v35 = vmul.f32 %v530_v20, %v2703_v11  ;;  %v2746_v40 = vadd.f32 %v525_v19, %v524_v10  ;;  %2176 = vmatpush3.bf16.msra.mxu1 %v2458_v22 }
  0xf9   :  { %v558_v33 = vsel %vm59_vm5, %v557_v27, 0.0  ;;  %v532_v34 = vrot.slane %v531_v31, 4  ;;  %v492_v37 = vmax.f32 %v2722_v21, %v2729_v28  ;;  %v518_v45 = vrot.slane %v2724_v24, 1 }
  0xfa   :  { %v551_v41 = vadd.f32 %v550_v30, %v549_v26  ;;  %v559_v42 = vrot.slane %v558_v33, 4  ;;  %v540_v48 = vsel %vm59_vm5, %v539_v35, 0.0  ;;  %v389_v49 = vadd.f32 %v2651_v25, %v388_v29  ;;  %v2451_v30 = vld [vmem:[%s3218_s2 + $0x80] sm:$0xff]  }
  0xfb   :  { %v533_v46 = vadd.f32 %v532_v34, %v531_v31  ;;  %v541_v53 = vrot.slane %v540_v48, 4  ;;  %v527_v60 = vrot.slane %v2746_v40, 1  ;;  %v519_v26 = vadd.f32 %v518_v45, %v2724_v24  ;;  %v2452_v24 = vld [vmem:[%s3218_s2 + $0x40] sm:$0xff]   ;;  %2155 = vmatprep.subr.bf16.mxu0 %v2451_v30 }
  0xfc   :  { %v552_v51 = vrot.slane %v551_v41, 2  ;;  %v560_v52 = vadd.f32 %v559_v42, %v558_v33  ;;  %v2310_v54 = vpop.f32.mrb[16].mxu1  ;;  %v489_v58 = vmax.f32 %v386_v43, %v389_v49  ;;  %v2461_v45 = vld [vmem:[%s3218_s2 + $0x100] sm:$0xff]   ;;  %2156 = vmatpush3.bf16.msra.mxu0 %v2452_v24 }
  0xfd   :  { %v534_v57 = vrot.slane %v533_v46, 2  ;;  %v401_v59 = vpop.f32.mrb[17].mxu1  ;;  %v542_v63 = vadd.f32 %v541_v53, %v540_v48  ;;  %v410_v3 = vadd.f32 %v2310_v54, %v2651_v25  ;;  %v528_v39 = vadd.f32 %v527_v60, %v2746_v40  ;;  %v2455_v40 = vld [vmem:[%s3218_s2 + $0x88] sm:$0xff]   ;;  %v2462_v53 = vld [vmem:[%s3218_s2 + $0xc0] sm:$0xff]   ;;  %2177 = vmatprep.subr.bf16.mxu1 %v2461_v45 }
  0xfe   :  { %v553_v61 = vadd.f32 %v552_v51, %v551_v41  ;;  %v561_v62 = vrot.slane %v560_v52, 2  ;;  %v2311_v0 = vpop.f32.mrb[18].mxu1  ;;  %v2767_v4 = vadd.f32 %v2651_v25, %v401_v59  ;;  %v2456_v60 = vld [vmem:[%s3218_s2 + $0x48] sm:$0xff]   ;;  %2178 = vmatpush3.bf16.msra.mxu1 %v2462_v53  ;;  %2157 = vmatprep.subr.bf16.mxu0 %v2455_v40 }
  0xff   :  { %v535_v2 = vadd.f32 %v534_v57, %v533_v46  ;;  %v413_v5 = vadd.f32 %v2311_v0, %v2651_v25  ;;  %v404_v6 = vpop.f32.mrb[19].mxu1  ;;  %v543_v12 = vrot.slane %v542_v63, 2 }
 0x100   :  { %v554_v9 = vrot.slane %v553_v61, 1  ;;  %v562_v10 = vadd.f32 %v561_v62, %v560_v52  ;;  %v405_v13 = vadd.f32 %v2651_v25, %v404_v6  ;;  %2158 = vmatpush3.bf16.msra.mxu0 %v2456_v60 }
 0x101   :  { %v536_v15 = vrot.slane %v535_v2, 1  ;;  %v490_v16 = vmax.f32 %v410_v3, %v413_v5  ;;  %v544_v19 = vadd.f32 %v543_v12, %v542_v63  ;;  %2159 = vmatprep.subr.bf16.mxu0 %v2459_v1 }
 0x102   :  { %v563_v18 = vrot.slane %v562_v10, 1  ;;  %v495_v20 = vmax.f32 %v2767_v4, %v405_v13  ;;  %v555_v33 = vadd.f32 %v554_v9, %v553_v61 }
 0x103   :  { %v537_v27 = vadd.f32 %v536_v15, %v535_v2  ;;  %v2785_v29 = vmax.f32 %v489_v58, %v490_v16  ;;  %v545_v31 = vrot.slane %v544_v19, 1 }
 0x104   :  { %v2314_v32 = vpop.f32.mrb[20].mxu1  ;;  %v564_v41 = vadd.f32 %v563_v18, %v562_v10  ;;  %v2460_v10 = vld [vmem:[%s3218_s2 + $0x50] sm:$0xff]  }
 0x105   :  { %v538_v34 = vadd.f32 %v537_v27, %v519_v26  ;;  %v566_v35 = vmul.f32 %v2670_v47, %v2785_v29  ;;  %v417_v38 = vpop.f32.mrb[21].mxu1  ;;  %v546_v42 = vadd.f32 %v545_v31, %v544_v19  ;;  %v426_v43 = vadd.f32 %v2314_v32, %v2651_v25  ;;  %2160 = vmatpush3.bf16.msra.mxu0 %v2460_v10 }
 0x106   :  { %v2315_v44 = vpop.f32.mrb[22].mxu1  ;;  %v418_v56 = vadd.f32 %v2651_v25, %v417_v38 }
 0x107   :  { %v556_v46 = vadd.f32 %v555_v33, %v538_v34  ;;  %v567_v48 = vsel %vm59_vm5, %v566_v35, 0.0  ;;  %v575_v49 = vmul.f32 %v566_v35, %v2785_v29  ;;  %v429_v51 = vadd.f32 %v2315_v44, %v2651_v25  ;;  %v420_v52 = vpop.f32.mrb[23].mxu1 }
 0x108   :  { %v547_v54 = vadd.f32 %v546_v42, %v528_v39  ;;  %v568_v55 = vrot.slane %v567_v48, 4  ;;  %v421_v57 = vadd.f32 %v2651_v25, %v420_v52 }
 0x109   :  { %v576_v58 = vsel %vm59_vm5, %v575_v49, 0.0  ;;  %v496_v59 = vmax.f32 %v426_v43, %v429_v51 }
 0x10a   :  { %v565_v61 = vadd.f32 %v564_v41, %v547_v54  ;;  %v569_v62 = vadd.f32 %v568_v55, %v567_v48  ;;  %v577_v63 = vrot.slane %v576_v58, 4  ;;  %v493_v0 = vmax.f32 %v418_v56, %v421_v57 }
 0x10b   :  { %v2818_v2 = vmax.f32 %v495_v20, %v496_v59 }
 0x10c   :  { %v570_v3 = vrot.slane %v569_v62, 2  ;;  %v578_v4 = vadd.f32 %v577_v63, %v576_v58  ;;  %v2823_v5 = vmax.f32 %v492_v37, %v493_v0  ;;  %v2318_v6 = vpop.f32.mrb[24].mxu1 }
 0x10d   :  { %v602_v8 = vmul.f32 %v2670_v47, %v2818_v2  ;;  %v433_v9 = vpop.f32.mrb[25].mxu1  ;;  %v2835_v37 = vadd.f32 %v2318_v6, %v2651_v25 }
 0x10e   :  { %v571_v12 = vadd.f32 %v570_v3, %v569_v62  ;;  %v579_v13 = vrot.slane %v578_v4, 2  ;;  %v584_v14 = vmul.f32 %v2670_v47, %v2823_v5  ;;  %v2319_v15 = vpop.f32.mrb[26].mxu1  ;;  %v434_v39 = vadd.f32 %v2651_v25, %v433_v9 }
 0x10f   :  { %v603_v21 = vsel %vm59_vm5, %v602_v8, 0.0  ;;  %v611_v28 = vmul.f32 %v602_v8, %v2818_v2  ;;  %v2838_v16 = vadd.f32 %v2319_v15, %v2651_v25  ;;  %v436_v17 = vpop.f32.mrb[27].mxu1 }
 0x110   :  { %v572_v18 = vrot.slane %v571_v12, 1  ;;  %v580_v19 = vadd.f32 %v579_v13, %v578_v4  ;;  %v604_v20 = vrot.slane %v603_v21, 4  ;;  %v585_v22 = vsel %vm59_vm5, %v584_v14, 0.0 }
 0x111   :  { %v612_v26 = vsel %vm59_vm5, %v611_v28, 0.0  ;;  %v586_v27 = vrot.slane %v585_v22, 4  ;;  %v593_v30 = vmul.f32 %v584_v14, %v2823_v5  ;;  %v501_v31 = vmax.f32 %v2835_v37, %v2838_v16 }
 0x112   :  { %v573_v32 = vadd.f32 %v572_v18, %v571_v12  ;;  %v581_v33 = vrot.slane %v580_v19, 1  ;;  %v605_v34 = vadd.f32 %v604_v20, %v603_v21  ;;  %v613_v35 = vrot.slane %v612_v26, 4 }
 0x113   :  { %v587_v38 = vadd.f32 %v586_v27, %v585_v22  ;;  %v594_v24 = vsel %vm59_vm5, %v593_v30, 0.0  ;;  %v437_v41 = vadd.f32 %v2651_v25, %v436_v17 }
 0x114   :  { %v574_v42 = vadd.f32 %v573_v32, %v556_v46  ;;  %v582_v43 = vadd.f32 %v581_v33, %v580_v19  ;;  %v606_v44 = vrot.slane %v605_v34, 2  ;;  %v614_v45 = vadd.f32 %v613_v35, %v612_v26  ;;  %v2322_v48 = vpop.f32.mrb[28].mxu1 }
 0x115   :  { %v588_v49 = vrot.slane %v587_v38, 2  ;;  %v595_v51 = vrot.slane %v594_v24, 4  ;;  %v498_v52 = vmax.f32 %v434_v39, %v437_v41  ;;  %v449_v40 = vpop.f32.mrb[29].mxu1  ;;  %v458_v59 = vadd.f32 %v2322_v48, %v2651_v25 }
 0x116   :  { %v583_v53 = vadd.f32 %v582_v43, %v565_v61  ;;  %v607_v54 = vadd.f32 %v606_v44, %v605_v34  ;;  %v615_v55 = vrot.slane %v614_v45, 2  ;;  %v2323_v56 = vpop.f32.mrb[30].mxu1  ;;  %v450_v0 = vadd.f32 %v2651_v25, %v449_v40 }
 0x117   :  { %v589_v57 = vadd.f32 %v588_v49, %v587_v38  ;;  %v596_v58 = vadd.f32 %v595_v51, %v594_v24  ;;  %v461_v60 = vadd.f32 %v2323_v56, %v2651_v25  ;;  %v452_v62 = vpop.f32.mrb[31].mxu1 }
 0x118   :  { %v608_v46 = vrot.slane %v607_v54, 1  ;;  %v616_v63 = vadd.f32 %v615_v55, %v614_v45  ;;  %v453_v1 = vadd.f32 %v2651_v25, %v452_v62 }
 0x119   :  { %v590_v3 = vrot.slane %v589_v57, 1  ;;  %v597_v4 = vrot.slane %v596_v58, 2  ;;  %v499_v6 = vmax.f32 %v458_v59, %v461_v60 }
 0x11a   :  { %v504_v61 = vmax.f32 %v450_v0, %v453_v1  ;;  %v617_v12 = vrot.slane %v616_v63, 1  ;;  %v609_v14 = vadd.f32 %v608_v46, %v607_v54 }
 0x11b   :  { %v591_v8 = vadd.f32 %v590_v3, %v589_v57  ;;  %v598_v9 = vadd.f32 %v597_v4, %v596_v58  ;;  %v2852_v10 = vmax.f32 %v498_v52, %v499_v6 }
 0x11c   :  { %v2326_v13 = vpop.f32.mrb[32].mxu1  ;;  %v618_v38 = vadd.f32 %v617_v12, %v616_v63 }
 0x11d   :  { %v592_v15 = vadd.f32 %v591_v8, %v574_v42  ;;  %v599_v21 = vrot.slane %v598_v9, 1  ;;  %v620_v28 = vmul.f32 %v2670_v47, %v2852_v10  ;;  %v465_v17 = vpop.f32.mrb[33].mxu1  ;;  %v474_v18 = vadd.f32 %v2326_v13, %v2651_v25 }
 0x11e   :  { %v2327_v19 = vpop.f32.mrb[34].mxu1  ;;  %v466_v33 = vadd.f32 %v2651_v25, %v465_v17 }
 0x11f   :  { %v600_v20 = vadd.f32 %v599_v21, %v598_v9  ;;  %v610_v22 = vadd.f32 %v609_v14, %v592_v15  ;;  %v621_v26 = vsel %vm59_vm5, %v620_v28, 0.0  ;;  %v629_v27 = vmul.f32 %v620_v28, %v2852_v10  ;;  %v468_v30 = vpop.f32.mrb[35].mxu1 }
 0x120   :  { %v622_v32 = vrot.slane %v621_v26, 4  ;;  %v477_v34 = vadd.f32 %v2327_v19, %v2651_v25  ;;  %v469_v35 = vadd.f32 %v2651_v25, %v468_v30 }
 0x121   :  { %v601_v24 = vadd.f32 %v600_v20, %v583_v53  ;;  %v630_v39 = vsel %vm59_vm5, %v629_v27, 0.0 }
 0x122   :  { %v623_v41 = vadd.f32 %v622_v32, %v621_v26  ;;  %v631_v42 = vrot.slane %v630_v39, 4  ;;  %v505_v43 = vmax.f32 %v474_v18, %v477_v34  ;;  %v502_v44 = vmax.f32 %v466_v33, %v469_v35 }
 0x123   :  { %v619_v45 = vadd.f32 %v618_v38, %v601_v24 }
 0x124   :  { %v624_v48 = vrot.slane %v623_v41, 2  ;;  %v632_v49 = vadd.f32 %v631_v42, %v630_v39  ;;  %v2863_v51 = vmax.f32 %v504_v61, %v505_v43  ;;  %v2868_v52 = vmax.f32 %v501_v31, %v502_v44 }
 0x126   :  { %v625_v40 = vadd.f32 %v624_v48, %v623_v41  ;;  %v633_v25 = vrot.slane %v632_v49, 2  ;;  %v656_v53 = vmul.f32 %v2670_v47, %v2863_v51  ;;  %v638_v54 = vmul.f32 %v2670_v47, %v2868_v52  ;;  %v680_v48 = vld [vmem:[%s3217_s4 + $0x1] sm:$0x1] }
 0x128   :  { %v626_v55 = vrot.slane %v625_v40, 1  ;;  %v634_v56 = vadd.f32 %v633_v25, %v632_v49  ;;  %v657_v57 = vsel %vm59_vm5, %v656_v53, 0.0  ;;  %v665_v58 = vmul.f32 %v656_v53, %v2863_v51  ;;  %v2463_v25 = vld [vmem:[%s3218_s2 + $0x98] sm:$0xff]  }
 0x129   :  { %v658_v59 = vrot.slane %v657_v57, 4  ;;  %v639_v60 = vsel %vm59_vm5, %v638_v54, 0.0  ;;  %v647_v37 = vmul.f32 %v638_v54, %v2868_v52  ;;  %v689_v49 = vsub.s32 0, %v2657_v36  ;;  %v2464_v54 = vld [vmem:[%s3218_s2 + $0x58] sm:$0xff]   ;;  %v684_v36 = vld [vmem:[%s3217_s4 + $0x2] sm:$0x1]  ;;  %2161 = vmatprep.subr.bf16.mxu0 %v2463_v25 }
 0x12a   :  { %v627_v16 = vadd.f32 %v626_v55, %v625_v40  ;;  %v635_v31 = vrot.slane %v634_v56, 1  ;;  %v666_v62 = vsel %vm59_vm5, %v665_v58, 0.0  ;;  %v640_v46 = vrot.slane %v639_v60, 4  ;;  %v2465_v55 = vld [vmem:[%s3218_s2 + $0x108] sm:$0xff]   ;;  %2162 = vmatpush3.bf16.msra.mxu0 %v2464_v54  ;;  %v2479_v54 = vld [vmem:[%s3218_s2 + $0x190] sm:$0xff]  }
 0x12b   :  { %v659_v63 = vadd.f32 %v658_v59, %v657_v57  ;;  %v667_v0 = vrot.slane %v666_v62, 4  ;;  %v648_v47 = vsel %vm59_vm5, %v647_v37, 0.0  ;;  %2179 = vmatprep.subr.bf16.mxu1 %v2465_v55  ;;  %2328 = vmatprep.subr.bf16.mxu0 %v2538_v23  ;;  %v2480_v55 = vld [vmem:[%s3218_s2 + $0x150] sm:$0xff]  }
 0x12c   :  { %v628_v1 = vadd.f32 %v627_v16, %v610_v22  ;;  %v636_v3 = vadd.f32 %v635_v31, %v634_v56  ;;  %v641_v4 = vadd.f32 %v640_v46, %v639_v60  ;;  %v649_v6 = vrot.slane %v648_v47, 4  ;;  %v2466_v56 = vld [vmem:[%s3218_s2 + $0xc8] sm:$0xff]  }
 0x12d   :  { %v660_v61 = vrot.slane %v659_v63, 2  ;;  %v668_v8 = vadd.f32 %v667_v0, %v666_v62  ;;  %2180 = vmatpush3.bf16.msra.mxu1 %v2466_v56  ;;  %v2468_v0 = vld [vmem:[%s3218_s2 + $0x110] sm:$0xff]   ;;  %v2481_v56 = vld [vmem:[%s3218_s2 + $0x198] sm:$0xff]  }
 0x12e   :  { %v637_v9 = vadd.f32 %v636_v3, %v619_v45  ;;  %v642_v12 = vrot.slane %v641_v4, 2  ;;  %v650_v13 = vadd.f32 %v649_v6, %v648_v47  ;;  %2181 = vmatprep.subr.bf16.mxu1 %v2468_v0  ;;  %v2490_v0 = vld [vmem:[%s3218_s2 + $0x178] sm:$0xff]  }
 0x12f   :  { %v661_v14 = vadd.f32 %v660_v61, %v659_v63  ;;  %v669_v15 = vrot.slane %v668_v8, 2  ;;  %v2471_v61 = vld [vmem:[%s3218_s2 + $0x118] sm:$0xff]  }
 0x130   :  { %v643_v21 = vadd.f32 %v642_v12, %v641_v4  ;;  %v651_v28 = vrot.slane %v650_v13, 2 }
 0x131   :  { %v670_v17 = vadd.f32 %v669_v15, %v668_v8  ;;  %v662_v18 = vrot.slane %v661_v14, 1 }
 0x132   :  { %v644_v19 = vrot.slane %v643_v21, 1  ;;  %v652_v20 = vadd.f32 %v651_v28, %v650_v13  ;;  %v2928_v28 = vpop.f32.mrb[0].mxu0 }
 0x133   :  { %v671_v26 = vrot.slane %v670_v17, 1  ;;  %v663_v22 = vadd.f32 %v662_v18, %v661_v14 }
 0x134   :  { %v645_v27 = vadd.f32 %v644_v19, %v643_v21  ;;  %v653_v30 = vrot.slane %v652_v20, 1  ;;  %v2288_v19 = vpop.f32.mrb[1].mxu0 }
 0x135   :  { %v672_v34 = vadd.f32 %v671_v26, %v670_v17  ;;  %v2516_v19 = vld [vmem:[%s3218_s2 + $0x220] sm:$0xff]  }
 0x136   :  { %v646_v32 = vadd.f32 %v645_v27, %v628_v1  ;;  %v654_v33 = vadd.f32 %v653_v30, %v652_v20  ;;  %v100_v20 = vpop.f32.mrb[2].mxu0  ;;  %v2467_v27 = vld [vmem:[%s3218_s2 + $0x120] sm:$0xff]  }
 0x137   :  { %v2289_v30 = vpop.f32.mrb[3].mxu0  ;;  %v2517_v20 = vld [vmem:[%s3218_s2 + $0x268] sm:$0xff]  }
 0x138   :  { %v655_v35 = vadd.f32 %v654_v33, %v637_v9  ;;  %v664_v38 = vadd.f32 %v663_v22, %v646_v32  ;;  %v2470_v33 = vld [vmem:[%s3218_s2 + $0x128] sm:$0xff]  }
 0x13a   :  { %v673_v24 = vadd.f32 %v672_v34, %v655_v35  ;;  %v675_v39 = vmul.f32 0.055555556, %v664_v38 }
 0x13c   :  { %v676_v41 = vmul.f32 0.055555556, %v673_v24  ;;  %v677_v42 = vmul.f32 %v675_v39, %v675_v39  ;;  %v2473_v24 = vld [vmem:[%s3218_s2 + $0x130] sm:$0xff]  }
 0x13e   :  { %v678_v43 = vsub.f32 %v676_v41, %v677_v42 }
 0x140   :  { %v679_v44 = vmax.f32 %v678_v43, 0.0  ;;  %v2474_v43 = vld [vmem:[%s3218_s2 + $0x138] sm:$0xff]  }
 0x142   :  { %v681_v45 = vadd.f32 1e-05, %v679_v44  ;;  %v2475_v44 = vld [vmem:[%s3218_s2 + $0x180] sm:$0xff]  }
 0x144   :  { %2535 = vrsqrt.f32 %v681_v45 }
 0x14e   :  { %v2536_v40 = vpop.eup %2535 }
 0x14f   :  { %v683_v53 = vmul.f32 %v2536_v40, %v680_v48  ;;  %v2476_v48 = vld [vmem:[%s3218_s2 + $0x140] sm:$0xff]   ;;  %v2477_v40 = vld [vmem:[%s3218_s2 + $0x188] sm:$0xff]  }
 0x151   :  { %v685_v57 = vmul.f32 %v683_v53, %v675_v39  ;;  %v690_v58 = vrot.slane %v683_v53, %v689_v49  ;;  %v2478_v53 = vld [vmem:[%s3218_s2 + $0x148] sm:$0xff]  }
 0x153   :  { %v686_v59 = vsub.f32 %v684_v36, %v685_v57  ;;  %v710_v60 = vmul.f32 %v690_v58, %v2818_v2  ;;  %v704_v37 = vmul.f32 %v690_v58, %v2785_v29  ;;  %v701_v16 = vmul.f32 %v690_v58, %v2697_v7  ;;  %v2469_v2 = vld [vmem:[%s3218_s2 + $0xd0] sm:$0xff]   ;;  %v2482_v36 = vld [vmem:[%s3218_s2 + $0x158] sm:$0xff]   ;;  %v2483_v57 = vld [vmem:[%s3218_s2 + $0x1a0] sm:$0xff]  }
 0x154   :  { %v698_v31 = vmul.f32 %v690_v58, %v2703_v11  ;;  %v719_v62 = vmul.f32 %v690_v58, %v2863_v51  ;;  %v707_v46 = vmul.f32 %v690_v58, %v2823_v5  ;;  %v716_v63 = vmul.f32 %v690_v58, %v2868_v52  ;;  %2182 = vmatpush3.bf16.msra.mxu1 %v2469_v2 }
 0x155   :  { %v695_v47 = vrot.slane %v686_v59, %v689_v49  ;;  %v713_v29 = vmul.f32 %v690_v58, %v2852_v10  ;;  %v691_v7 = vmul.f32 %v690_v58, %v2675_v50  ;;  %v2472_v10 = vld [vmem:[%s3218_s2 + $0xd8] sm:$0xff]   ;;  %2183 = vmatprep.subr.bf16.mxu1 %v2471_v61  ;;  %v2484_v58 = vld [vmem:[%s3218_s2 + $0x160] sm:$0xff]   ;;  %v2485_v59 = vld [vmem:[%s3218_s2 + $0x1a8] sm:$0xff]  }
 0x156   :  { %v2495_v61 = vld [vmem:[%s3218_s2 + $0x1e0] sm:$0xff]  }
 0x157   :  { %v711_v11 = vadd.f32 %v710_v60, %v695_v47  ;;  %v705_v51 = vadd.f32 %v704_v37, %v695_v47  ;;  %v702_v1 = vadd.f32 %v701_v16, %v695_v47  ;;  %v699_v5 = vadd.f32 %v698_v31, %v695_v47  ;;  %v2486_v60 = vld [vmem:[%s3218_s2 + $0x168] sm:$0xff]   ;;  %v2487_v16 = vld [vmem:[%s3218_s2 + $0x1b0] sm:$0xff]  }
 0x158   :  { %v720_v52 = vadd.f32 %v719_v62, %v695_v47  ;;  %v708_v3 = vadd.f32 %v707_v46, %v695_v47  ;;  %v717_v4 = vadd.f32 %v716_v63, %v695_v47  ;;  %v696_v6 = vadd.f32 %v695_v47, %v691_v7  ;;  %2184 = vmatpush3.bf16.msra.mxu1 %v2472_v10  ;;  %v2488_v31 = vld [vmem:[%s3218_s2 + $0x170] sm:$0xff]   ;;  %v2489_v62 = vld [vmem:[%s3218_s2 + $0x1b8] sm:$0xff]   ;;  %v1974_v7 = vld [vmem:[%s3217_s4 + $0x3] ss:$0 sm:$0xff] }
 0x159   :  { %v712_v8 = vpack.c.bf16 %v711_v11, %v711_v11  ;;  %v706_v50 = vpack.c.bf16 %v705_v51, %v705_v51  ;;  %v714_v9 = vadd.f32 %v713_v29, %v695_v47  ;;  %v703_v12 = vpack.c.bf16 %v702_v1, %v702_v1  ;;  %2340 = vmatprep.subr.bf16.mxu1 %v2538_v23  ;;  %v2496_v10 = vld [vmem:[%s3218_s2 + $0x1e8] sm:$0xff]  }
 0x15a   :  { %v2921_v13 = vpack.c.bf16 %v699_v5, %v699_v5  ;;  %v721_v14 = vpack.c.bf16 %v720_v52, %v720_v52  ;;  %v709_v15 = vpack.c.bf16 %v708_v3, %v708_v3  ;;  %v2925_v21 = vpack.c.bf16 %v717_v4, %v717_v4  ;;  %v2491_v52 = vld [vmem:[%s3218_s2 + $0x1c0] sm:$0xff]   ;;  %v2492_v3 = vld [vmem:[%s3218_s2 + $0x1c8] sm:$0xff]   ;;  %v2493_v4 = vld [vmem:[%s3218_s2 + $0x1d0] sm:$0xff]  }
 0x15b   :  { %729 = vrot.lane.b32.xlu1 %v712_v8, %s2540_s30  ;;  %726 = vrot.lane.b32.xlu0 %v706_v50, %s2540_s30  ;;  %v697_v26 = vpack.c.bf16 %v696_v6, %v696_v6  ;;  %v715_v38 = vpack.c.bf16 %v714_v9, %v714_v9  ;;  %v3018_v1 = vadd.f32 %v1974_v7, %v2928_v28  ;;  %v2494_v6 = vld [vmem:[%s3218_s2 + $0x1d8] sm:$0xff]   ;;  %v2497_v8 = vld [vmem:[%s3218_s2 + $0x1f0] sm:$0xff]  }
 0x15c   :  { %v2507_v9 = vld [vmem:[%s3218_s2 + $0x240] sm:$0xff]   ;;  %v2513_v28 = vld [vmem:[%s3218_s2 + $0x258] sm:$0xff]  }
 0x15d   :  { %v1497_v5 = vpack.c.bf16 %v3018_v1, %v3018_v1  ;;  %v2499_v7 = vld [vmem:[%s3218_s2 + $0x280] sm:$0xff]  }
 0x15f   :  { %1173 = vrot.lane.b32.xlu1 %v703_v12, %s2540_s30  ;;  %723 = vrot.lane.b32.xlu0 %v2921_v13, %s2540_s30 }
 0x163   :  { %1179 = vrot.lane.b32.xlu1 %v721_v14, %s2540_s30  ;;  %1167 = vrot.lane.b32.xlu0 %v709_v15, %s2540_s30 }
 0x167   :  { %732 = vrot.lane.b32.xlu0 %v2925_v21, %s2540_s30 }
 0x1cd   :  { %v727_v17 = vpop.permute.xlu0 %726  ;;  %v730_v35 = vpop.permute.xlu1 %729 }
 0x1ce   :  { %v740_v18 = vsel %vm59_vm5, %v703_v12, %v727_v17  ;;  %v744_v42 = vsel %vm59_vm5, %v709_v15, %v730_v35  ;;  %v2508_v12 = vld [vmem:[%s3218_s2 + $0x200] sm:$0xff]   ;;  %v2511_v15 = vld [vmem:[%s3218_s2 + $0x250] sm:$0xff]   ;;  %v2514_v17 = vld [vmem:[%s3218_s2 + $0x218] sm:$0xff]  }
 0x1cf   :  { %1078 = vmatprep.mubr.bf16.mxu0 %v740_v18  ;;  %v1187_v49 = vrot.slane %v744_v42, 4  ;;  %v2515_v18 = vld [vmem:[%s3218_s2 + $0x260] sm:$0xff]  }
 0x1d1   :  { %v724_v22 = vpop.permute.xlu0 %723  ;;  %v1174_v37 = vpop.permute.xlu1 %1173 }
 0x1d2   :  { %v2935_v32 = vsel %vm59_vm5, %v697_v26, %v724_v22  ;;  %v1177_v46 = vsel %vm59_vm5, %v2921_v13, %v1174_v37  ;;  %v2509_v13 = vld [vmem:[%s3218_s2 + $0x248] sm:$0xff]  }
 0x1d3   :  { %1079 = vmatmul.mubr.bf16.vlgmr.msra.gmra.mrb[4].mxu0 %v2935_v32  ;;  %v1186_v2 = vrot.slane %v1177_v46, 4  ;;  %v2518_v26 = vld [vmem:[%s3218_s2 + $0x228] sm:$0xff]  }
 0x1d4   :  { %2329 = vmatpush3.bf16.msra.mxu0 %v2467_v27  ;;  %2336 = vmatprep.mubr.msk.bf16.mxu0 %vm2539_vm4, %v2538_v23 }
 0x1d5   :  { %v1168_v34 = vpop.permute.xlu0 %1167  ;;  %2330 = vmatprep.subr.bf16.mxu0 %v2538_v23  ;;  %v1180_v63 = vpop.permute.xlu1 %1179  ;;  %v1191_v11 = vsel %vm296_vm0, %v2935_v32, %v1186_v2 }
 0x1d6   :  { %v1171_v45 = vsel %vm59_vm5, %v706_v50, %v1168_v34  ;;  %v1183_v47 = vsel %vm59_vm5, %v2925_v21, %v1180_v63  ;;  %v2498_v50 = vld [vmem:[%s3218_s2 + $0x1f8] sm:$0xff]   ;;  %v2512_v21 = vld [vmem:[%s3218_s2 + $0x210] sm:$0xff]   ;;  %v2019_v34 = vld [vmem:[%s3217_s4 + $0x4] ss:$0 sm:$0xff] }
 0x1d7   :  { %v1194_v25 = vsel %vm296_vm0, %v1171_v45, %v1187_v49  ;;  %v1189_v29 = vrot.slane %v1183_v47, 4 }
 0x1d8   :  { %2331 = vmatpush3.bf16.msra.mxu0 %v2470_v33 }
 0x1d9   :  { %v733_v39 = vpop.permute.xlu0 %732  ;;  %2332 = vmatprep.subr.bf16.mxu0 %v2538_v23 }
 0x1da   :  { %v748_v41 = vsel %vm59_vm5, %v715_v38, %v733_v39 }
 0x1db   :  { %1118 = vmatprep.mubr.bf16.mxu1 %v748_v41  ;;  %v1197_v51 = vsel %vm296_vm0, %v748_v41, %v1189_v29 }
 0x1dc   :  { %2333 = vmatpush3.bf16.msra.mxu0 %v2473_v24  ;;  %1119 = vmatmul.mubr.bf16.vlgmr.msra.gmra.mrb[36].mxu1 %v744_v42 }
 0x1dd   :  { %2334 = vmatprep.subr.bf16.mxu0 %v2538_v23  ;;  %2356 = vmatprep.mubr.msk.bf16.mxu1 %vm2539_vm4, %v2538_v23 }
 0x1de   :  { %2341 = vmatpush3.bf16.msra.mxu1 %v2491_v52  ;;  %v2502_v52 = vld [vmem:[%s3218_s2 + $0x298] sm:$0xff]  }
 0x1df   :  { %2342 = vmatprep.subr.bf16.mxu1 %v2538_v23 }
 0x1e0   :  { %2335 = vmatpush3.bf16.msra.mxu0 %v2474_v43 }
 0x1e1   :  { %2196 = vmatprep.subr.bf16.mxu0 %v2475_v44 }
 0x1e2   :  { %2343 = vmatpush3.bf16.msra.mxu1 %v2492_v3  ;;  %v2503_v3 = vld [vmem:[%s3218_s2 + $0x2a0] sm:$0xff]  }
 0x1e3   :  { %2337 = vmatmul.mubr.msk.bf16.vlgmr.msra.gmra.mrb[8].mxu0 %vm59_vm5, %v721_v14  ;;  %2344 = vmatprep.subr.bf16.mxu1 %v2538_v23  ;;  %v2510_v14 = vld [vmem:[%s3218_s2 + $0x208] sm:$0xff]  }
 0x1e4   :  { %2197 = vmatpush3.bf16.msra.mxu0 %v2476_v48  ;;  %1364 = vmatprep.mubr.bf16.mxu0 %v1194_v25 }
 0x1e5   :  { %2198 = vmatprep.subr.bf16.mxu0 %v2477_v40 }
 0x1e6   :  { %2345 = vmatpush3.bf16.msra.mxu1 %v2493_v4  ;;  %v2504_v4 = vld [vmem:[%s3218_s2 + $0x2a8] sm:$0xff]  }
 0x1e7   :  { %2346 = vmatprep.subr.bf16.mxu1 %v2538_v23 }
 0x1e8   :  { %2199 = vmatpush3.bf16.msra.mxu0 %v2478_v53 }
 0x1e9   :  { %2200 = vmatprep.subr.bf16.mxu0 %v2479_v54 }
 0x1ea   :  { %2347 = vmatpush3.bf16.msra.mxu1 %v2494_v6  ;;  %v2505_v6 = vld [vmem:[%s3218_s2 + $0x2b0] sm:$0xff]  }
 0x1eb   :  { %2348 = vmatprep.subr.bf16.mxu1 %v2538_v23 }
 0x1ec   :  { %2201 = vmatpush3.bf16.msra.mxu0 %v2480_v55 }
 0x1ed   :  { %2202 = vmatprep.subr.bf16.mxu0 %v2481_v56  ;;  %v2057_v56 = vld [vmem:[%s3217_s4 + $0x5] ss:$0 sm:$0xff] }
 0x1ee   :  { %2349 = vmatpush3.bf16.msra.mxu1 %v2495_v61  ;;  %v2506_v61 = vld [vmem:[%s3218_s2 + $0x2b8] sm:$0xff]  }
 0x1ef   :  { %2350 = vmatprep.subr.bf16.mxu1 %v2538_v23 }
 0x1f0   :  { %2203 = vmatpush3.bf16.msra.mxu0 %v2482_v36 }
 0x1f1   :  { %2204 = vmatprep.subr.bf16.mxu0 %v2483_v57 }
 0x1f2   :  { %2351 = vmatpush3.bf16.msra.mxu1 %v2496_v10 }
 0x1f3   :  { %2352 = vmatprep.subr.bf16.mxu1 %v2538_v23 }
 0x1f4   :  { %2205 = vmatpush3.bf16.msra.mxu0 %v2484_v58 }
 0x1f5   :  { %2206 = vmatprep.subr.bf16.mxu0 %v2485_v59 }
 0x1f6   :  { %2353 = vmatpush3.bf16.msra.mxu1 %v2497_v8  ;;  %v2519_v8 = vld [vmem:[%s3218_s2 + $0x270] sm:$0xff]  }
 0x1f7   :  { %2354 = vmatprep.subr.bf16.mxu1 %v2538_v23 }
 0x1f8   :  { %2207 = vmatpush3.bf16.msra.mxu0 %v2486_v60 }
 0x1f9   :  { %2208 = vmatprep.subr.bf16.mxu0 %v2487_v16 }
 0x1fa   :  { %2355 = vmatpush3.bf16.msra.mxu1 %v2498_v50  ;;  %v2520_v50 = vld [vmem:[%s3218_s2 + $0x230] sm:$0xff]  }
 0x1fb   :  { %2360 = vmatprep.subr.bf16.mxu1 %v2538_v23 }
 0x1fc   :  { %2209 = vmatpush3.bf16.msra.mxu0 %v2488_v31 }
 0x1fd   :  { %2210 = vmatprep.subr.bf16.mxu0 %v2489_v62 }
 0x200   :  { %2211 = vmatpush3.bf16.msra.mxu0 %v2490_v0 }
 0x201   :  { %2233 = vmatprep.subr.bf16.mxu0 %v2507_v9  ;;  %v2521_v9 = vld [vmem:[%s3218_s2 + $0x278] sm:$0xff]  }
 0x203   :  { %1365 = vmatmul.mubr.bf16.vlgmr.msra.gmra.mrb[12].mxu0 %v1191_v11 }
 0x204   :  { %1372 = vmatprep.mubr.bf16.mxu0 %v1197_v51  ;;  %2234 = vmatpush3.bf16.msra.mxu0 %v2508_v12  ;;  %v2500_v51 = vld [vmem:[%s3218_s2 + $0x288] sm:$0xff]   ;;  %v2522_v12 = vld [vmem:[%s3218_s2 + $0x238] sm:$0xff]  }
 0x205   :  { %2235 = vmatprep.subr.bf16.mxu0 %v2509_v13  ;;  %v2074_v13 = vld [vmem:[%s3217_s4 + $0x6] ss:$0 sm:$0xff] }
 0x208   :  { %2236 = vmatpush3.bf16.msra.mxu0 %v2510_v14 }
 0x209   :  { %2237 = vmatprep.subr.bf16.mxu0 %v2511_v15 }
 0x20b   :  { %1373 = vmatmul.mubr.bf16.gmra.mrb[16].mxu0 %v1194_v25 }
 0x20c   :  { %1728 = vmatprep.mubr.bf16.mxu0 %v1497_v5  ;;  %2238 = vmatpush3.bf16.msra.mxu0 %v2512_v21  ;;  %v2501_v5 = vld [vmem:[%s3218_s2 + $0x290] sm:$0xff]  }
 0x20d   :  { %2239 = vmatprep.subr.bf16.mxu0 %v2513_v28 }
 0x210   :  { %2240 = vmatpush3.bf16.msra.mxu0 %v2514_v17 }
 0x211   :  { %2241 = vmatprep.subr.bf16.mxu0 %v2515_v18 }
 0x214   :  { %2242 = vmatpush3.bf16.msra.mxu0 %v2516_v19 }
 0x215   :  { %2243 = vmatprep.subr.bf16.mxu0 %v2517_v20  ;;  %v2523_v20 = vld [vmem:[%s3215_s3 + $0x8] sm:$0xff]  }
 0x218   :  { %2244 = vmatpush3.bf16.msra.mxu0 %v2518_v26 }
 0x219   :  { %2245 = vmatprep.subr.bf16.mxu0 %v2519_v8 }
 0x21c   :  { %2246 = vmatpush3.bf16.msra.mxu0 %v2520_v50 }
 0x21d   :  { %2247 = vmatprep.subr.bf16.mxu0 %v2521_v9 }
 0x220   :  { %2248 = vmatpush3.bf16.msra.mxu0 %v2522_v12 }
 0x221   :  { %2380 = vmatprep.subr.bf16.mxu0 %v2538_v23 }
 0x2a6   :  { %v2163_v27 = vpop.f32.mrb[4].mxu0 }
 0x2a7   :  { %v2164_v30 = vpop.f32.mrb[5].mxu0 }
 0x2a8   :  { %v2165_v22 = vadd.f32 %v2164_v30, %v2163_v27  ;;  %v2166_v32 = vpop.f32.mrb[6].mxu0  ;;  %v2524_v27 = vld [vmem:[%s3215_s3 + $0x10] sm:$0xff]   ;;  %v2526_v30 = vld [vmem:[%s3215_s3 + $0x20] sm:$0xff]  }
 0x2a9   :  { %v2167_v33 = vpop.f32.mrb[7].mxu0 }
 0x2aa   :  { %v1081_v24 = vadd.f32 %v2165_v22, %v2019_v34  ;;  %v2527_v22 = vld [vmem:[%s3215_s3 + $0x28] sm:$0xff]  }
 0x2af   :  { %v2185_v35 = vpop.f32.mrb[36].mxu1 }
 0x2b0   :  { %v2186_v38 = vpop.f32.mrb[37].mxu1 }
 0x2b1   :  { %v2187_v39 = vadd.f32 %v2186_v38, %v2185_v35  ;;  %v2188_v41 = vpop.f32.mrb[38].mxu1  ;;  %v2528_v38 = vld [vmem:[%s3215_s3 + $0x30] sm:$0xff]  }
 0x2b2   :  { %v2189_v42 = vpop.f32.mrb[39].mxu1  ;;  %v2531_v41 = vld [vmem:[%s3218_s2 + $0x2c0] sm:$0xff]  }
 0x2b3   :  { %v1121_v43 = vadd.f32 %v2187_v39, %v1081_v24  ;;  %v2529_v24 = vld [vmem:[%s3215_s3 + $0x38] sm:$0xff]   ;;  %v2530_v39 = vld [vmem:[%s3215_s3 + $0x40] sm:$0xff]   ;;  %v2532_v42 = vld [vmem:[%s3218_s2 + $0x2c8] sm:$0xff]  }
 0x2b6   :  { %v1160_v44 = vpop.f32.mrb[8].mxu0 }
 0x2b7   :  { %v3093_v45 = vadd.f32 %v1160_v44, %v1121_v43  ;;  %v2338_v48 = vpop.f32.mrb[9].mxu0  ;;  %v2083_v44 = vld [vmem:[%s3217_s4 + $0x7] ss:$0 sm:$0xff] }
 0x2b8   :  { %v1163_v49 = vpop.f32.mrb[10].mxu0 }
 0x2b9   :  { %v2339_v40 = vpop.f32.mrb[11].mxu0  ;;  %v1498_v10 = vpack.c.bf16 %v3093_v45, %v3093_v45 }
 0x2d6   :  { %v2212_v25 = vpop.f32.mrb[12].mxu0 }
 0x2d7   :  { %v2213_v53 = vpop.f32.mrb[13].mxu0 }
 0x2d8   :  { %v2214_v54 = vadd.f32 %v2213_v53, %v2212_v25  ;;  %v2215_v55 = vpop.f32.mrb[14].mxu0 }
 0x2d9   :  { %v2216_v36 = vpop.f32.mrb[15].mxu0 }
 0x2da   :  { %v2217_v57 = vadd.f32 %v2216_v36, %v2215_v55  ;;  %v1367_v58 = vadd.f32 %v2214_v54, %v2057_v56  ;;  %v2534_v36 = vld [vmem:[%s3218_s2 + $0x2d8] sm:$0xff]  }
 0x2dc   :  { %v1370_v59 = vadd.f32 %v2217_v57, %v2057_v56  ;;  %v2108_v57 = vld [vmem:[%s3217_s4 + $0x8] ss:$0 sm:$0xff] }
 0x2de   :  { %v1381_v60 = vmax.f32 %v1367_v58, %v1370_v59  ;;  %v2218_v37 = vpop.f32.mrb[16].mxu0 }
 0x2df   :  { %v2219_v16 = vpop.f32.mrb[17].mxu0 }
 0x2e0   :  { %v2220_v31 = vadd.f32 %v2219_v16, %v2218_v37  ;;  %v2221_v62 = vpop.f32.mrb[18].mxu0 }
 0x2e1   :  { %v2222_v46 = vpop.f32.mrb[19].mxu0 }
 0x2e2   :  { %v2223_v63 = vadd.f32 %v2222_v46, %v2221_v62  ;;  %v1375_v0 = vadd.f32 %v2220_v31, %v2057_v56 }
 0x2e4   :  { %v1378_v2 = vadd.f32 %v2223_v63, %v2057_v56  ;;  %v2533_v56 = vld [vmem:[%s3218_s2 + $0x2d0] sm:$0xff]  }
 0x2e6   :  { %v1382_v47 = vmax.f32 %v1375_v0, %v1378_v2 }
 0x2e8   :  { %v1383_v29 = vmax.f32 %v1381_v60, %v1382_v47 }
 0x2ea   :  { %v1384_v11 = vpack.c.bf16 %v1383_v29, %v1383_v29 }
 0x2ec   :  { %2357 = vmatmul.mubr.bf16.vlgmr.msra.gmra.mrb[40].mxu1 %v1384_v11 }
 0x2ed   :  { %2361 = vmatpush3.bf16.msra.mxu1 %v2499_v7  ;;  %2376 = vmatprep.mubr.msk.bf16.mxu1 %vm2539_vm4, %v2538_v23 }
 0x2ee   :  { %2362 = vmatprep.subr.bf16.mxu1 %v2538_v23 }
 0x2f1   :  { %2363 = vmatpush3.bf16.msra.mxu1 %v2500_v51 }
 0x2f2   :  { %2364 = vmatprep.subr.bf16.mxu1 %v2538_v23 }
 0x2f5   :  { %2365 = vmatpush3.bf16.msra.mxu1 %v2501_v5 }
 0x2f6   :  { %2366 = vmatprep.subr.bf16.mxu1 %v2538_v23 }
 0x2f9   :  { %2367 = vmatpush3.bf16.msra.mxu1 %v2502_v52 }
 0x2fa   :  { %2368 = vmatprep.subr.bf16.mxu1 %v2538_v23 }
 0x2fd   :  { %2369 = vmatpush3.bf16.msra.mxu1 %v2503_v3 }
 0x2fe   :  { %2370 = vmatprep.subr.bf16.mxu1 %v2538_v23 }
 0x301   :  { %2371 = vmatpush3.bf16.msra.mxu1 %v2504_v4 }
 0x302   :  { %2372 = vmatprep.subr.bf16.mxu1 %v2538_v23 }
 0x305   :  { %2373 = vmatpush3.bf16.msra.mxu1 %v2505_v6 }
 0x306   :  { %2374 = vmatprep.subr.bf16.mxu1 %v2538_v23 }
 0x309   :  { %2375 = vmatpush3.bf16.msra.mxu1 %v2506_v61 }
 0x30a   :  { %2400 = vmatprep.subr.bf16.mxu1 %v2538_v23 }
 0x30c   :  { %2377 = vmatmul.mubr.bf16.vlgmr.msra.gmra.mrb[44].mxu1 %v1498_v10 }
 0x30d   :  { %2408 = vmatprep.mubr.msk.bf16.mxu1 %vm2539_vm4, %v2538_v23  ;;  %2401 = vmatpush3.bf16.msra.mxu1 %v2531_v41 }
 0x30e   :  { %2402 = vmatprep.subr.bf16.mxu1 %v2538_v23 }
 0x311   :  { %2403 = vmatpush3.bf16.msra.mxu1 %v2532_v42 }
 0x312   :  { %2404 = vmatprep.subr.bf16.mxu1 %v2538_v23 }
 0x315   :  { %2405 = vmatpush3.bf16.msra.mxu1 %v2533_v56 }
 0x316   :  { %2406 = vmatprep.subr.bf16.mxu1 %v2538_v23 }
 0x319   :  { %2407 = vmatpush3.bf16.msra.mxu1 %v2534_v36 }
 0x3bf   :  { %v1488_v14 = vpop.f32.mrb[40].mxu1 }
 0x3c0   :  { %v1489_v15 = vadd.f32 %v2074_v13, %v1488_v14  ;;  %v2358_v21 = vpop.f32.mrb[41].mxu1 }
 0x3c1   :  { %v1491_v28 = vpop.f32.mrb[42].mxu1 }
 0x3c2   :  { %v1494_v17 = vadd.f32 %v1489_v15, %v3018_v1  ;;  %v2359_v18 = vpop.f32.mrb[43].mxu1  ;;  %v2525_v1 = vld [vmem:[%s3215_s3 + $0x18] sm:$0xff]  }
 0x3c4   :  { %v1495_v19 = vadd.f32 %v1494_v17, %v3093_v45 }
 0x3c6   :  { %v1496_v26 = vpack.c.bf16 %v1495_v19, %v1495_v19 }
 0x3c8   :  { %1729 = vmatmul.mubr.bf16.vlgmr.msra.gmra.mrb[20].mxu0 %v1496_v26 }
 0x3c9   :  { %2381 = vmatpush3.bf16.msra.mxu0 %v2523_v20  ;;  %2396 = vmatprep.mubr.msk.bf16.mxu0 %vm2539_vm4, %v2538_v23 }
 0x3ca   :  { %2382 = vmatprep.subr.bf16.mxu0 %v2538_v23 }
 0x3cd   :  { %2383 = vmatpush3.bf16.msra.mxu0 %v2524_v27 }
 0x3ce   :  { %2384 = vmatprep.subr.bf16.mxu0 %v2538_v23 }
 0x3d1   :  { %2385 = vmatpush3.bf16.msra.mxu0 %v2525_v1 }
 0x3d2   :  { %2386 = vmatprep.subr.bf16.mxu0 %v2538_v23 }
 0x3d5   :  { %2387 = vmatpush3.bf16.msra.mxu0 %v2526_v30 }
 0x3d6   :  { %2388 = vmatprep.subr.bf16.mxu0 %v2538_v23 }
 0x3d9   :  { %2389 = vmatpush3.bf16.msra.mxu0 %v2527_v22 }
 0x3da   :  { %2390 = vmatprep.subr.bf16.mxu0 %v2538_v23 }
 0x3dd   :  { %2391 = vmatpush3.bf16.msra.mxu0 %v2528_v38 }
 0x3de   :  { %2392 = vmatprep.subr.bf16.mxu0 %v2538_v23 }
 0x3df   :  { %v1770_v32 = vpop.f32.mrb[44].mxu1 }
 0x3e0   :  { %v2378_v33 = vpop.f32.mrb[45].mxu1 }
 0x3e1   :  { %v1773_v34 = vpop.f32.mrb[46].mxu1  ;;  %2393 = vmatpush3.bf16.msra.mxu0 %v2529_v24 }
 0x3e2   :  { %v2379_v35 = vpop.f32.mrb[47].mxu1  ;;  %2394 = vmatprep.subr.bf16.mxu0 %v2538_v23  ;;  %v2117_v23 = vld [vmem:[%s3217_s4 + $0x9] ss:$0 sm:$0xff] }
 0x3e5   :  { %2395 = vmatpush3.bf16.msra.mxu0 %v2530_v39 }
 0x49b   :  { %v2249_v43 = vpop.f32.mrb[20].mxu0 }
 0x49c   :  { %v2250_v45 = vpop.f32.mrb[21].mxu0 }
 0x49d   :  { %v2251_v48 = vadd.f32 %v2250_v45, %v2249_v43  ;;  %v2252_v49 = vpop.f32.mrb[22].mxu0 }
 0x49e   :  { %v2253_v40 = vpop.f32.mrb[23].mxu0 }
 0x49f   :  { %v1731_v25 = vadd.f32 %v2251_v48, %v2083_v44 }
 0x4a1   :  { %v1771_v53 = vadd.f32 %v1770_v32, %v1731_v25 }
 0x4a3   :  { %v1776_v54 = vmax.f32 %v1771_v53, 0.0 }
 0x4a5   :  { %v1777_v55 = vpack.c.bf16 %v1776_v54, %v1776_v54 }
 0x4a7   :  { %2397 = vmatmul.mubr.bf16.vlgmr.msra.gmra.mrb[24].mxu0 %v1777_v55 }
 0x57a   :  { %v1881_v58 = vpop.f32.mrb[24].mxu0 }
 0x57b   :  { %v1882_v59 = vadd.f32 %v2108_v57, %v1881_v58  ;;  %v2398_v60 = vpop.f32.mrb[25].mxu0 }
 0x57c   :  { %v1884_v37 = vpop.f32.mrb[26].mxu0 }
 0x57d   :  { %v1887_v16 = vmax.f32 %v1882_v59, 0.0  ;;  %v2399_v31 = vpop.f32.mrb[27].mxu0 }
 0x57f   :  { %v1888_v62 = vpack.c.bf16 %v1887_v16, %v1887_v16 }
 0x581   :  { %2409 = vmatmul.mubr.msk.bf16.vlgmr.msra.gmra.mrb[48].mxu1 %vm59_vm5, %v1888_v62 }
 0x654   :  { %v1963_v46 = vpop.f32.mrb[48].mxu1 }
 0x655   :  { %v1964_v63 = vadd.f32 %v2117_v23, %v1963_v46  ;;  %v2410_v0 = vpop.f32.mrb[49].mxu1 }
 0x656   :  { %v1966_v2 = vpop.f32.mrb[50].mxu1 }
 0x657   :  { %1969 = vst [vmem:[%s3220_s5] sm:$0xff] %v1964_v63  ;;  %v2411_v47 = vpop.f32.mrb[51].mxu1 }

</bundles_post_ra>
